<compile_context>
chip_gen: v7x
topology: tpu7x:2x2x1
jax: 0.10.0
libtpu: 0.0.40
codegen_flags: <defaults>
</compile_context>

<pallas_src>
import jax
import jax.numpy as jnp
from jax.experimental import pallas as pl
from jax.experimental.pallas import tpu as pltpu

LANE = 128


def _round_up(x, m):
    return ((x + m - 1) // m) * m


def _m_tiling(m, max_block=1024, min_grid=2):
    """Pick (tm, grid_m) for the row axis.

    No padding is applied: the last block may overhang the array (Pallas clamps
    the reads and masks the write-back).  grid_m is forced to >= min_grid when M
    is large enough so the 'parallel' axis shards across both v7x TensorCores
    even at small batch sizes."""
    grid_target = max(pl.cdiv(m, max_block), min_grid if m >= 16 else 1)
    tm = _round_up(pl.cdiv(m, grid_target), 8)
    grid_m = pl.cdiv(m, tm)
    return tm, grid_m


# ----------------------------------------------------------------------------
# Pallas kernels
# ----------------------------------------------------------------------------
def _conv_relu_pool_kernel(p_ref, w_ref, b_ref, o_ref):
    """o = relu(max_t(P[t] @ W) + b) over the 4 pool taps t.

    p_ref: (4, tm, K) bf16 stacked tap patches; w_ref: (K, 128) bf16;
    b_ref: (1, 128) f32.  The weight tile is loaded once and reused for all 4
    matmuls; the max is a sequential chain so at most two (tm, 128) f32
    temporaries are live; bias + ReLU run once after the max."""
    w = w_ref[...]
    acc = jnp.dot(p_ref[0], w, preferred_element_type=jnp.float32)
    acc = jnp.maximum(acc, jnp.dot(p_ref[1], w, preferred_element_type=jnp.float32))
    acc = jnp.maximum(acc, jnp.dot(p_ref[2], w, preferred_element_type=jnp.float32))
    acc = jnp.maximum(acc, jnp.dot(p_ref[3], w, preferred_element_type=jnp.float32))
    o_ref[...] = jnp.maximum(acc + b_ref[...], 0.0).astype(o_ref.dtype)


def _fc3_kernel(x_ref, w1_ref, b1_ref, w2_ref, b2_ref, w3_ref, b3_ref, o_ref):
    """relu(x@W1+b1) -> relu(.@W2+b2) -> .@W3+b3.

    All intermediates (128-wide) stay in VMEM/vregs; f32 accumulate; f32 output."""
    h = jnp.dot(x_ref[...], w1_ref[...], preferred_element_type=jnp.float32) + b1_ref[...]
    h = jnp.maximum(h, 0.0).astype(jnp.bfloat16)
    h = jnp.dot(h, w2_ref[...], preferred_element_type=jnp.float32) + b2_ref[...]
    h = jnp.maximum(h, 0.0).astype(jnp.bfloat16)
    o = jnp.dot(h, w3_ref[...], preferred_element_type=jnp.float32) + b3_ref[...]
    o_ref[...] = o.astype(o_ref.dtype)


# ----------------------------------------------------------------------------
# Wrappers around pallas_call
# ----------------------------------------------------------------------------
def _stacked_pool_patches(x_nhwc, kh, kw, hp, wp):
    """(4, N*hp*wp, kh*kw*C) bf16: tap-stacked im2col patches for the conv
    outputs feeding a 2x2/stride-2 max pool.  Tap t=(a,b) holds the patches for
    conv output positions (2*i+a, 2*j+b); K is ordered (kh, kw, Cin) to match
    the prepared weight matrix.  Pure layout glue (strided slices + concat)."""
    n, _, _, c = x_nhwc.shape
    taps = []
    for a in range(2):
        for b in range(2):
            cols = [x_nhwc[:, a + i:a + i + 2 * hp:2, b + j:b + j + 2 * wp:2, :]
                    for i in range(kh) for j in range(kw)]
            tap = jnp.concatenate(cols, axis=-1)                 # (N, hp, wp, K)
            taps.append(tap.reshape(1, n * hp * wp, kh * kw * c))
    return jnp.concatenate(taps, axis=0)                         # (4, M, K)


def conv_relu_pool(x_nhwc, w_mat, b_mat, *, kh, kw, hp, wp, max_block=1024):
    """Fused Conv2d(valid, stride 1) + ReLU + MaxPool2d(2, 2).

    x_nhwc: (N, H, W, Cin) bf16; w_mat: (kh*kw*Cin, 128) bf16; b_mat: (1, 128) f32.
    Returns (N*hp*wp, 128) bf16 with rows ordered (n, hp, wp), channels in lanes."""
    n = x_nhwc.shape[0]
    cin = x_nhwc.shape[3]
    k = kh * kw * cin
    cout_pad = w_mat.shape[1]
    m = n * hp * wp

    patches = _stacked_pool_patches(x_nhwc, kh, kw, hp, wp)      # (4, m, k)
    tm, grid_m = _m_tiling(m, max_block)

    flops = 4 * 2 * m * k * cout_pad
    bytes_accessed = (4 * m * k + k * cout_pad + m * cout_pad) * 2 + cout_pad * 4

    return pl.pallas_call(
        _conv_relu_pool_kernel,
        out_shape=jax.ShapeDtypeStruct((m, cout_pad), jnp.bfloat16),
        grid=(grid_m,),
        in_specs=[pl.BlockSpec((4, tm, k), lambda i: (0, i, 0)),
                  pl.BlockSpec((k, cout_pad), lambda i: (0, 0)),
                  pl.BlockSpec((1, cout_pad), lambda i: (0, 0))],
        out_specs=pl.BlockSpec((tm, cout_pad), lambda i: (i, 0)),
        compiler_params=pltpu.CompilerParams(dimension_semantics=("parallel",)),
        cost_estimate=pl.CostEstimate(flops=flops, transcendentals=0,
                                      bytes_accessed=bytes_accessed),
    )(patches, w_mat, b_mat)


def fc_stack(x, w1, b1, w2, b2, w3, b3, *, max_block=1024):
    """fc1+ReLU -> fc2+ReLU -> fc3 in one kernel.  Returns (M, 128) f32."""
    m, kin = x.shape
    tm, grid_m = _m_tiling(m, max_block)

    flops = 2 * m * (kin * LANE + LANE * LANE + LANE * LANE)
    bytes_accessed = ((m * kin + kin * LANE + 2 * LANE * LANE) * 2
                      + 3 * LANE * 4 + m * LANE * 4)

    return pl.pallas_call(
        _fc3_kernel,
        out_shape=jax.ShapeDtypeStruct((m, LANE), jnp.float32),
        grid=(grid_m,),
        in_specs=[pl.BlockSpec((tm, kin), lambda i: (i, 0)),
                  pl.BlockSpec((kin, LANE), lambda i: (0, 0)),
                  pl.BlockSpec((1, LANE), lambda i: (0, 0)),
                  pl.BlockSpec((LANE, LANE), lambda i: (0, 0)),
                  pl.BlockSpec((1, LANE), lambda i: (0, 0)),
                  pl.BlockSpec((LANE, LANE), lambda i: (0, 0)),
                  pl.BlockSpec((1, LANE), lambda i: (0, 0))],
        out_specs=pl.BlockSpec((tm, LANE), lambda i: (i, 0)),
        compiler_params=pltpu.CompilerParams(dimension_semantics=("parallel",)),
        cost_estimate=pl.CostEstimate(flops=flops, transcendentals=0,
                                      bytes_accessed=bytes_accessed),
    )(x, w1, b1, w2, b2, w3, b3)


# ----------------------------------------------------------------------------
# Parameters: deterministic init + one-time kernel-layout prep
# ----------------------------------------------------------------------------
def init_params():
    key = jax.random.PRNGKey(0)
    ks = jax.random.split(key, 10)

    def uniform(k, shape, fan_in):
        bound = 1.0 / (fan_in ** 0.5)
        return jax.random.uniform(k, shape, jnp.float32, -bound, bound)

    return {
        "conv1_w": uniform(ks[0], (6, 3, 5, 5), 3 * 5 * 5),
        "conv1_b": uniform(ks[1], (6,), 3 * 5 * 5),
        "conv2_w": uniform(ks[2], (16, 6, 5, 5), 6 * 5 * 5),
        "conv2_b": uniform(ks[3], (16,), 6 * 5 * 5),
        "fc1_w": uniform(ks[4], (120, 400), 400),   # PyTorch Linear: (out, in)
        "fc1_b": uniform(ks[5], (120,), 400),
        "fc2_w": uniform(ks[6], (84, 120), 120),
        "fc2_b": uniform(ks[7], (84,), 120),
        "fc3_w": uniform(ks[8], (10, 84), 84),
        "fc3_b": uniform(ks[9], (10,), 84),
    }


def prepare_params(params):
    """One-time prep: pad output dims to 128 lanes, pre-transpose FC weights,
    permute fc1 columns to the (h, w, c) flatten order, cast MXU operands to bf16."""
    def conv_w(w):
        cout, cin, kh, kw = w.shape
        # K ordered (kh, kw, Cin) to match _stacked_pool_patches
        wm = jnp.transpose(w, (2, 3, 1, 0)).reshape(kh * kw * cin, cout)
        return jnp.pad(wm, ((0, 0), (0, LANE - cout))).astype(jnp.bfloat16)

    def pad_bias(b):
        return jnp.pad(b, (0, LANE - b.shape[0])).reshape(1, LANE).astype(jnp.float32)

    # fc1: torch columns are ordered (c, h, w); our conv2 output flattens as
    # (h, w, c) -> permute the weight columns once instead of transposing the
    # activation every forward pass.
    w1 = params["fc1_w"].reshape(120, 16, 5, 5).transpose(0, 2, 3, 1).reshape(120, 400)
    w1 = jnp.pad(w1.T, ((0, 0), (0, LANE - 120))).astype(jnp.bfloat16)          # (400,128)
    w2 = jnp.pad(params["fc2_w"].T, ((0, LANE - 120), (0, LANE - 84))).astype(jnp.bfloat16)
    w3 = jnp.pad(params["fc3_w"].T, ((0, LANE - 84), (0, LANE - 10))).astype(jnp.bfloat16)

    return {
        "c1_w": conv_w(params["conv1_w"]), "c1_b": pad_bias(params["conv1_b"]),
        "c2_w": conv_w(params["conv2_w"]), "c2_b": pad_bias(params["conv2_b"]),
        "fc1_w": w1, "fc1_b": pad_bias(params["fc1_b"]),
        "fc2_w": w2, "fc2_b": pad_bias(params["fc2_b"]),
        "fc3_w": w3, "fc3_b": pad_bias(params["fc3_b"]),
    }


# ----------------------------------------------------------------------------
# Forward pass (3 Pallas kernels) + pure-JAX reference
# ----------------------------------------------------------------------------
def net_forward(x, prep):
    """x: (N, 3, 32, 32) f32 NCHW  ->  logits (N, 10) f32."""
    n = x.shape[0]
    xb = jnp.transpose(x, (0, 2, 3, 1)).astype(jnp.bfloat16)              # NHWC bf16
    # conv1(5x5, 3->6) + ReLU + pool  ->  14x14x6
    y1 = conv_relu_pool(xb, prep["c1_w"], prep["c1_b"], kh=5, kw=5, hp=14, wp=14)
    y1 = y1[:, :6].reshape(n, 14, 14, 6)
    # conv2(5x5, 6->16) + ReLU + pool ->  5x5x16
    y2 = conv_relu_pool(y1, prep["c2_w"], prep["c2_b"], kh=5, kw=5, hp=5, wp=5)
    feat = y2[:, :16].reshape(n, 400)          # (h, w, c) order; fc1 cols pre-permuted
    # fc1 + ReLU -> fc2 + ReLU -> fc3 (single fused kernel)
    logits = fc_stack(feat, prep["fc1_w"], prep["fc1_b"],
                      prep["fc2_w"], prep["fc2_b"],
                      prep["fc3_w"], prep["fc3_b"])
    return logits[:, :10]


def net_reference(x, params):
    """Plain-JAX f32 reference matching the PyTorch module exactly."""
    def conv(x, w, b):
        y = jax.lax.conv_general_dilated(
            x, w, window_strides=(1, 1), padding="VALID",
            dimension_numbers=("NCHW", "OIHW", "NCHW"))
        return jax.nn.relu(y + b.reshape(1, -1, 1, 1))

    def pool(x):
        return jax.lax.reduce_window(x, -jnp.inf, jax.lax.max,
                                     (1, 1, 2, 2), (1, 1, 2, 2), "VALID")

    x = pool(conv(x, params["conv1_w"], params["conv1_b"]))
    x = pool(conv(x, params["conv2_w"], params["conv2_b"]))
    x = x.reshape(x.shape[0], -1)
    x = jax.nn.relu(x @ params["fc1_w"].T + params["fc1_b"])
    x = jax.nn.relu(x @ params["fc2_w"].T + params["fc2_b"])
    return x @ params["fc3_w"].T + params["fc3_b"]


if __name__ == "__main__":
    key = jax.random.PRNGKey(0)
    # Spatial size 32 is forced by the 16*5*5 flatten in the reference module.
    x = jax.random.normal(key, (2, 3, 32, 32), dtype=jnp.float32)
    params = init_params()
    prep = prepare_params(params)          # one-time weight layout prep

    logits = jax.block_until_ready(jax.jit(net_forward)(x, prep))

    assert logits.shape == (2, 10), logits.shape
    assert bool(jnp.all(jnp.isfinite(logits)))

    # Numerical sanity check vs. a pure-JAX f32 reference (bf16 MXU inputs,
    # f32 accumulation -> small expected absolute + relative error).
    ref = jax.jit(net_reference)(x, params)
    abs_err = float(jnp.max(jnp.abs(logits - ref)))
    rel_err = abs_err / (float(jnp.max(jnp.abs(ref))) + 1e-6)
    assert abs_err < 0.1, f"max abs error vs reference too large: {abs_err}"
    assert rel_err < 0.2, f"relative error vs reference too large: {rel_err}"

    print("KERNEL_OK")
</pallas_src>

<mosaic_0001>
module attributes {stable_mosaic.version = 11 : i64} {
  func.func @_conv_relu_pool_kernel(%arg0: i32, %arg1: memref<4x200x75xbf16, #tpu.memory_space<vmem>>, %arg2: memref<75x128xbf16, #tpu.memory_space<vmem>>, %arg3: memref<1x128xf32, #tpu.memory_space<vmem>>, %arg4: memref<200x128xbf16, #tpu.memory_space<vmem>>) attributes {dimension_semantics = [#tpu.dimension_semantics<parallel>], iteration_bounds = array<i64: 2>, scalar_prefetch = 0 : i64, scratch_operands = 0 : i64, tpu.core_type = #tpu.core_type<tc>, window_params = [{transform_indices = @transform_0, window_bounds = array<i64: 4, 200, 75>}, {pipeline_mode = #tpu.pipeline_mode<synchronous>, transform_indices = @transform_1, window_bounds = array<i64: 75, 128>}, {pipeline_mode = #tpu.pipeline_mode<synchronous>, transform_indices = @transform_2, window_bounds = array<i64: 1, 128>}, {transform_indices = @transform_3, window_bounds = array<i64: 200, 128>}]} {
    %c0 = arith.constant 0 : index
    %c0_0 = arith.constant 0 : index
    %0 = vector.load %arg2[%c0, %c0_0] : memref<75x128xbf16, #tpu.memory_space<vmem>>, vector<75x128xbf16>
    %c0_1 = arith.constant 0 : index
    %c0_2 = arith.constant 0 : index
    %c0_3 = arith.constant 0 : index
    %1 = vector.load %arg1[%c0_1, %c0_2, %c0_3] : memref<4x200x75xbf16, #tpu.memory_space<vmem>>, vector<1x200x75xbf16>
    %2 = vector.shape_cast %1 : vector<1x200x75xbf16> to vector<200x75xbf16>
    %cst = arith.constant dense<0.000000e+00> : vector<200x128xf32>
    %3 = tpu.matmul %2, %0, %cst {dimension_numbers = #tpu.dot_dimension_numbers<[1], [0], [0], [1], [0, 0, 1, 1], [], []>} : vector<200x75xbf16>, vector<75x128xbf16>, vector<200x128xf32> -> vector<200x128xf32>
    %c1 = arith.constant 1 : index
    %c0_4 = arith.constant 0 : index
    %c0_5 = arith.constant 0 : index
    %4 = vector.load %arg1[%c1, %c0_4, %c0_5] : memref<4x200x75xbf16, #tpu.memory_space<vmem>>, vector<1x200x75xbf16>
    %5 = vector.shape_cast %4 : vector<1x200x75xbf16> to vector<200x75xbf16>
    %cst_6 = arith.constant dense<0.000000e+00> : vector<200x128xf32>
    %6 = tpu.matmul %5, %0, %cst_6 {dimension_numbers = #tpu.dot_dimension_numbers<[1], [0], [0], [1], [0, 0, 1, 1], [], []>} : vector<200x75xbf16>, vector<75x128xbf16>, vector<200x128xf32> -> vector<200x128xf32>
    %7 = arith.maximumf %3, %6 : vector<200x128xf32>
    %c2 = arith.constant 2 : index
    %c0_7 = arith.constant 0 : index
    %c0_8 = arith.constant 0 : index
    %8 = vector.load %arg1[%c2, %c0_7, %c0_8] : memref<4x200x75xbf16, #tpu.memory_space<vmem>>, vector<1x200x75xbf16>
    %9 = vector.shape_cast %8 : vector<1x200x75xbf16> to vector<200x75xbf16>
    %cst_9 = arith.constant dense<0.000000e+00> : vector<200x128xf32>
    %10 = tpu.matmul %9, %0, %cst_9 {dimension_numbers = #tpu.dot_dimension_numbers<[1], [0], [0], [1], [0, 0, 1, 1], [], []>} : vector<200x75xbf16>, vector<75x128xbf16>, vector<200x128xf32> -> vector<200x128xf32>
    %11 = arith.maximumf %7, %10 : vector<200x128xf32>
    %c3 = arith.constant 3 : index
    %c0_10 = arith.constant 0 : index
    %c0_11 = arith.constant 0 : index
    %12 = vector.load %arg1[%c3, %c0_10, %c0_11] : memref<4x200x75xbf16, #tpu.memory_space<vmem>>, vector<1x200x75xbf16>
    %13 = vector.shape_cast %12 : vector<1x200x75xbf16> to vector<200x75xbf16>
    %cst_12 = arith.constant dense<0.000000e+00> : vector<200x128xf32>
    %14 = tpu.matmul %13, %0, %cst_12 {dimension_numbers = #tpu.dot_dimension_numbers<[1], [0], [0], [1], [0, 0, 1, 1], [], []>} : vector<200x75xbf16>, vector<75x128xbf16>, vector<200x128xf32> -> vector<200x128xf32>
    %15 = arith.maximumf %11, %14 : vector<200x128xf32>
    %c0_13 = arith.constant 0 : index
    %c0_14 = arith.constant 0 : index
    %16 = vector.load %arg3[%c0_13, %c0_14] : memref<1x128xf32, #tpu.memory_space<vmem>>, vector<1x128xf32>
    %17 = vector.broadcast %16 : vector<1x128xf32> to vector<200x128xf32>
    %18 = arith.addf %15, %17 : vector<200x128xf32>
    %cst_15 = arith.constant 0.000000e+00 : f32
    %19 = vector.broadcast %cst_15 : f32 to vector<200x128xf32>
    %20 = arith.maximumf %18, %19 : vector<200x128xf32>
    %21 = arith.truncf %20 : vector<200x128xf32> to vector<200x128xbf16>
    %c0_16 = arith.constant 0 : index
    %c0_17 = arith.constant 0 : index
    %22 = vector.load %arg4[%c0_16, %c0_17] : memref<200x128xbf16, #tpu.memory_space<vmem>>, vector<200x128xbf16>
    tpu.vector_store %arg4[%c0_16, %c0_17], %21 {strides = array<i32>} : memref<200x128xbf16, #tpu.memory_space<vmem>>, vector<200x128xbf16>,
    return
  }
  func.func @transform_0(%arg0: i32) -> (i32, i32, i32) {
    %c0_i32 = arith.constant 0 : i32
    %c0_i32_0 = arith.constant 0 : i32
    %c0_i32_1 = arith.constant 0 : i32
    return %c0_i32, %arg0, %c0_i32_0 : i32, i32, i32
  }
  func.func @transform_1(%arg0: i32) -> (i32, i32) {
    %c0_i32 = arith.constant 0 : i32
    %c0_i32_0 = arith.constant 0 : i32
    %c0_i32_1 = arith.constant 0 : i32
    return %c0_i32, %c0_i32_0 : i32, i32
  }
  func.func @transform_2(%arg0: i32) -> (i32, i32) {
    %c0_i32 = arith.constant 0 : i32
    %c0_i32_0 = arith.constant 0 : i32
    %c0_i32_1 = arith.constant 0 : i32
    return %c0_i32, %c0_i32_0 : i32, i32
  }
  func.func @transform_3(%arg0: i32) -> (i32, i32) {
    %c0_i32 = arith.constant 0 : i32
    %c0_i32_0 = arith.constant 0 : i32
    return %arg0, %c0_i32 : i32, i32
  }
}

module attributes {stable_mosaic.version = 11 : i64} {
  func.func @_conv_relu_pool_kernel(%arg0: i32, %arg1: memref<4x32x150xbf16, #tpu.memory_space<vmem>>, %arg2: memref<150x128xbf16, #tpu.memory_space<vmem>>, %arg3: memref<1x128xf32, #tpu.memory_space<vmem>>, %arg4: memref<32x128xbf16, #tpu.memory_space<vmem>>) attributes {dimension_semantics = [#tpu.dimension_semantics<parallel>], iteration_bounds = array<i64: 2>, scalar_prefetch = 0 : i64, scratch_operands = 0 : i64, tpu.core_type = #tpu.core_type<tc>, window_params = [{transform_indices = @transform_0, window_bounds = array<i64: 4, 32, 150>}, {pipeline_mode = #tpu.pipeline_mode<synchronous>, transform_indices = @transform_1, window_bounds = array<i64: 150, 128>}, {pipeline_mode = #tpu.pipeline_mode<synchronous>, transform_indices = @transform_2, window_bounds = array<i64: 1, 128>}, {transform_indices = @transform_3, window_bounds = array<i64: 32, 128>}]} {
    %c0 = arith.constant 0 : index
    %c0_0 = arith.constant 0 : index
    %0 = vector.load %arg2[%c0, %c0_0] : memref<150x128xbf16, #tpu.memory_space<vmem>>, vector<150x128xbf16>
    %c0_1 = arith.constant 0 : index
    %c0_2 = arith.constant 0 : index
    %c0_3 = arith.constant 0 : index
    %1 = vector.load %arg1[%c0_1, %c0_2, %c0_3] : memref<4x32x150xbf16, #tpu.memory_space<vmem>>, vector<1x32x150xbf16>
    %2 = vector.shape_cast %1 : vector<1x32x150xbf16> to vector<32x150xbf16>
    %cst = arith.constant dense<0.000000e+00> : vector<32x128xf32>
    %3 = tpu.matmul %2, %0, %cst {dimension_numbers = #tpu.dot_dimension_numbers<[1], [0], [0], [1], [0, 0, 1, 1], [], []>} : vector<32x150xbf16>, vector<150x128xbf16>, vector<32x128xf32> -> vector<32x128xf32>
    %c1 = arith.constant 1 : index
    %c0_4 = arith.constant 0 : index
    %c0_5 = arith.constant 0 : index
    %4 = vector.load %arg1[%c1, %c0_4, %c0_5] : memref<4x32x150xbf16, #tpu.memory_space<vmem>>, vector<1x32x150xbf16>
    %5 = vector.shape_cast %4 : vector<1x32x150xbf16> to vector<32x150xbf16>
    %cst_6 = arith.constant dense<0.000000e+00> : vector<32x128xf32>
    %6 = tpu.matmul %5, %0, %cst_6 {dimension_numbers = #tpu.dot_dimension_numbers<[1], [0], [0], [1], [0, 0, 1, 1], [], []>} : vector<32x150xbf16>, vector<150x128xbf16>, vector<32x128xf32> -> vector<32x128xf32>
    %7 = arith.maximumf %3, %6 : vector<32x128xf32>
    %c2 = arith.constant 2 : index
    %c0_7 = arith.constant 0 : index
    %c0_8 = arith.constant 0 : index
    %8 = vector.load %arg1[%c2, %c0_7, %c0_8] : memref<4x32x150xbf16, #tpu.memory_space<vmem>>, vector<1x32x150xbf16>
    %9 = vector.shape_cast %8 : vector<1x32x150xbf16> to vector<32x150xbf16>
    %cst_9 = arith.constant dense<0.000000e+00> : vector<32x128xf32>
    %10 = tpu.matmul %9, %0, %cst_9 {dimension_numbers = #tpu.dot_dimension_numbers<[1], [0], [0], [1], [0, 0, 1, 1], [], []>} : vector<32x150xbf16>, vector<150x128xbf16>, vector<32x128xf32> -> vector<32x128xf32>
    %11 = arith.maximumf %7, %10 : vector<32x128xf32>
    %c3 = arith.constant 3 : index
    %c0_10 = arith.constant 0 : index
    %c0_11 = arith.constant 0 : index
    %12 = vector.load %arg1[%c3, %c0_10, %c0_11] : memref<4x32x150xbf16, #tpu.memory_space<vmem>>, vector<1x32x150xbf16>
    %13 = vector.shape_cast %12 : vector<1x32x150xbf16> to vector<32x150xbf16>
    %cst_12 = arith.constant dense<0.000000e+00> : vector<32x128xf32>
    %14 = tpu.matmul %13, %0, %cst_12 {dimension_numbers = #tpu.dot_dimension_numbers<[1], [0], [0], [1], [0, 0, 1, 1], [], []>} : vector<32x150xbf16>, vector<150x128xbf16>, vector<32x128xf32> -> vector<32x128xf32>
    %15 = arith.maximumf %11, %14 : vector<32x128xf32>
    %c0_13 = arith.constant 0 : index
    %c0_14 = arith.constant 0 : index
    %16 = vector.load %arg3[%c0_13, %c0_14] : memref<1x128xf32, #tpu.memory_space<vmem>>, vector<1x128xf32>
    %17 = vector.broadcast %16 : vector<1x128xf32> to vector<32x128xf32>
    %18 = arith.addf %15, %17 : vector<32x128xf32>
    %cst_15 = arith.constant 0.000000e+00 : f32
    %19 = vector.broadcast %cst_15 : f32 to vector<32x128xf32>
    %20 = arith.maximumf %18, %19 : vector<32x128xf32>
    %21 = arith.truncf %20 : vector<32x128xf32> to vector<32x128xbf16>
    %c0_16 = arith.constant 0 : index
    %c0_17 = arith.constant 0 : index
    %22 = vector.load %arg4[%c0_16, %c0_17] : memref<32x128xbf16, #tpu.memory_space<vmem>>, vector<32x128xbf16>
    tpu.vector_store %arg4[%c0_16, %c0_17], %21 {strides = array<i32>} : memref<32x128xbf16, #tpu.memory_space<vmem>>, vector<32x128xbf16>,
    return
  }
  func.func @transform_0(%arg0: i32) -> (i32, i32, i32) {
    %c0_i32 = arith.constant 0 : i32
    %c0_i32_0 = arith.constant 0 : i32
    %c0_i32_1 = arith.constant 0 : i32
    return %c0_i32, %arg0, %c0_i32_0 : i32, i32, i32
  }
  func.func @transform_1(%arg0: i32) -> (i32, i32) {
    %c0_i32 = arith.constant 0 : i32
    %c0_i32_0 = arith.constant 0 : i32
    %c0_i32_1 = arith.constant 0 : i32
    return %c0_i32, %c0_i32_0 : i32, i32
  }
  func.func @transform_2(%arg0: i32) -> (i32, i32) {
    %c0_i32 = arith.constant 0 : i32
    %c0_i32_0 = arith.constant 0 : i32
    %c0_i32_1 = arith.constant 0 : i32
    return %c0_i32, %c0_i32_0 : i32, i32
  }
  func.func @transform_3(%arg0: i32) -> (i32, i32) {
    %c0_i32 = arith.constant 0 : i32
    %c0_i32_0 = arith.constant 0 : i32
    return %arg0, %c0_i32 : i32, i32
  }
}

module attributes {stable_mosaic.version = 11 : i64} {
  func.func @_fc3_kernel(%arg0: i32, %arg1: memref<8x400xbf16, #tpu.memory_space<vmem>>, %arg2: memref<400x128xbf16, #tpu.memory_space<vmem>>, %arg3: memref<1x128xf32, #tpu.memory_space<vmem>>, %arg4: memref<128x128xbf16, #tpu.memory_space<vmem>>, %arg5: memref<1x128xf32, #tpu.memory_space<vmem>>, %arg6: memref<128x128xbf16, #tpu.memory_space<vmem>>, %arg7: memref<1x128xf32, #tpu.memory_space<vmem>>, %arg8: memref<8x128xf32, #tpu.memory_space<vmem>>) attributes {dimension_semantics = [#tpu.dimension_semantics<parallel>], iteration_bounds = array<i64: 1>, scalar_prefetch = 0 : i64, scratch_operands = 0 : i64, tpu.core_type = #tpu.core_type<tc>, window_params = [{transform_indices = @transform_0, window_bounds = array<i64: 8, 400>}, {pipeline_mode = #tpu.pipeline_mode<synchronous>, transform_indices = @transform_1, window_bounds = array<i64: 400, 128>}, {pipeline_mode = #tpu.pipeline_mode<synchronous>, transform_indices = @transform_2, window_bounds = array<i64: 1, 128>}, {pipeline_mode = #tpu.pipeline_mode<synchronous>, transform_indices = @transform_3, window_bounds = array<i64: 128, 128>}, {pipeline_mode = #tpu.pipeline_mode<synchronous>, transform_indices = @transform_4, window_bounds = array<i64: 1, 128>}, {pipeline_mode = #tpu.pipeline_mode<synchronous>, transform_indices = @transform_5, window_bounds = array<i64: 128, 128>}, {pipeline_mode = #tpu.pipeline_mode<synchronous>, transform_indices = @transform_6, window_bounds = array<i64: 1, 128>}, {transform_indices = @transform_7, window_bounds = array<i64: 8, 128>}]} {
    %c0 = arith.constant 0 : index
    %c0_0 = arith.constant 0 : index
    %0 = vector.load %arg1[%c0, %c0_0] : memref<8x400xbf16, #tpu.memory_space<vmem>>, vector<8x400xbf16>
    %c0_1 = arith.constant 0 : index
    %c0_2 = arith.constant 0 : index
    %1 = vector.load %arg2[%c0_1, %c0_2] : memref<400x128xbf16, #tpu.memory_space<vmem>>, vector<400x128xbf16>
    %cst = arith.constant dense<0.000000e+00> : vector<8x128xf32>
    %2 = tpu.matmul %0, %1, %cst {dimension_numbers = #tpu.dot_dimension_numbers<[1], [0], [0], [1], [0, 0, 1, 1], [], []>} : vector<8x400xbf16>, vector<400x128xbf16>, vector<8x128xf32> -> vector<8x128xf32>
    %c0_3 = arith.constant 0 : index
    %c0_4 = arith.constant 0 : index
    %3 = vector.load %arg3[%c0_3, %c0_4] : memref<1x128xf32, #tpu.memory_space<vmem>>, vector<1x128xf32>
    %4 = vector.broadcast %3 : vector<1x128xf32> to vector<8x128xf32>
    %5 = arith.addf %2, %4 : vector<8x128xf32>
    %cst_5 = arith.constant 0.000000e+00 : f32
    %6 = vector.broadcast %cst_5 : f32 to vector<8x128xf32>
    %7 = arith.maximumf %5, %6 : vector<8x128xf32>
    %8 = arith.truncf %7 : vector<8x128xf32> to vector<8x128xbf16>
    %c0_6 = arith.constant 0 : index
    %c0_7 = arith.constant 0 : index
    %9 = vector.load %arg4[%c0_6, %c0_7] : memref<128x128xbf16, #tpu.memory_space<vmem>>, vector<128x128xbf16>
    %cst_8 = arith.constant dense<0.000000e+00> : vector<8x128xf32>
    %10 = tpu.matmul %8, %9, %cst_8 {dimension_numbers = #tpu.dot_dimension_numbers<[1], [0], [0], [1], [0, 0, 1, 1], [], []>} : vector<8x128xbf16>, vector<128x128xbf16>, vector<8x128xf32> -> vector<8x128xf32>
    %c0_9 = arith.constant 0 : index
    %c0_10 = arith.constant 0 : index
    %11 = vector.load %arg5[%c0_9, %c0_10] : memref<1x128xf32, #tpu.memory_space<vmem>>, vector<1x128xf32>
    %12 = vector.broadcast %11 : vector<1x128xf32> to vector<8x128xf32>
    %13 = arith.addf %10, %12 : vector<8x128xf32>
    %cst_11 = arith.constant 0.000000e+00 : f32
    %14 = vector.broadcast %cst_11 : f32 to vector<8x128xf32>
    %15 = arith.maximumf %13, %14 : vector<8x128xf32>
    %16 = arith.truncf %15 : vector<8x128xf32> to vector<8x128xbf16>
    %c0_12 = arith.constant 0 : index
    %c0_13 = arith.constant 0 : index
    %17 = vector.load %arg6[%c0_12, %c0_13] : memref<128x128xbf16, #tpu.memory_space<vmem>>, vector<128x128xbf16>
    %cst_14 = arith.constant dense<0.000000e+00> : vector<8x128xf32>
    %18 = tpu.matmul %16, %17, %cst_14 {dimension_numbers = #tpu.dot_dimension_numbers<[1], [0], [0], [1], [0, 0, 1, 1], [], []>} : vector<8x128xbf16>, vector<128x128xbf16>, vector<8x128xf32> -> vector<8x128xf32>
    %c0_15 = arith.constant 0 : index
    %c0_16 = arith.constant 0 : index
    %19 = vector.load %arg7[%c0_15, %c0_16] : memref<1x128xf32, #tpu.memory_space<vmem>>, vector<1x128xf32>
    %20 = vector.broadcast %19 : vector<1x128xf32> to vector<8x128xf32>
    %21 = arith.addf %18, %20 : vector<8x128xf32>
    %c0_17 = arith.constant 0 : index
    %c0_18 = arith.constant 0 : index
    %22 = vector.load %arg8[%c0_17, %c0_18] : memref<8x128xf32, #tpu.memory_space<vmem>>, vector<8x128xf32>
    tpu.vector_store %arg8[%c0_17, %c0_18], %21 {strides = array<i32>} : memref<8x128xf32, #tpu.memory_space<vmem>>, vector<8x128xf32>,
    return
  }
  func.func @transform_0(%arg0: i32) -> (i32, i32) {
    %c0_i32 = arith.constant 0 : i32
    %c0_i32_0 = arith.constant 0 : i32
    return %arg0, %c0_i32 : i32, i32
  }
  func.func @transform_1(%arg0: i32) -> (i32, i32) {
    %c0_i32 = arith.constant 0 : i32
    %c0_i32_0 = arith.constant 0 : i32
    %c0_i32_1 = arith.constant 0 : i32
    return %c0_i32, %c0_i32_0 : i32, i32
  }
  func.func @transform_2(%arg0: i32) -> (i32, i32) {
    %c0_i32 = arith.constant 0 : i32
    %c0_i32_0 = arith.constant 0 : i32
    %c0_i32_1 = arith.constant 0 : i32
    return %c0_i32, %c0_i32_0 : i32, i32
  }
  func.func @transform_3(%arg0: i32) -> (i32, i32) {
    %c0_i32 = arith.constant 0 : i32
    %c0_i32_0 = arith.constant 0 : i32
    %c0_i32_1 = arith.constant 0 : i32
    return %c0_i32, %c0_i32_0 : i32, i32
  }
  func.func @transform_4(%arg0: i32) -> (i32, i32) {
    %c0_i32 = arith.constant 0 : i32
    %c0_i32_0 = arith.constant 0 : i32
    %c0_i32_1 = arith.constant 0 : i32
    return %c0_i32, %c0_i32_0 : i32, i32
  }
  func.func @transform_5(%arg0: i32) -> (i32, i32) {
    %c0_i32 = arith.constant 0 : i32
    %c0_i32_0 = arith.constant 0 : i32
    %c0_i32_1 = arith.constant 0 : i32
    return %c0_i32, %c0_i32_0 : i32, i32
  }
  func.func @transform_6(%arg0: i32) -> (i32, i32) {
    %c0_i32 = arith.constant 0 : i32
    %c0_i32_0 = arith.constant 0 : i32
    %c0_i32_1 = arith.constant 0 : i32
    return %c0_i32, %c0_i32_0 : i32, i32
  }
  func.func @transform_7(%arg0: i32) -> (i32, i32) {
    %c0_i32 = arith.constant 0 : i32
    %c0_i32_0 = arith.constant 0 : i32
    return %arg0, %c0_i32 : i32, i32
  }
}

</mosaic_0001>

<bundles_post_ra>
// kernel: net_forward.3
= control target key start
LH: loop header
LB: loop body
LE: loop exit
PB: predicated region body
PF: predicated region fallthrough
CT: control target
= control target key end

     0   :  { %s3381_s12 = smov 0   ;;  %s3383_s13 = smov 0   ;;  %s4263_s0 = inlined_call_operand.vmem [shape: bf16[4,392,75], index: 0, kind: input, shape index: {}]   ;;  %s4264_s1 = inlined_call_operand.vmem [shape: bf16[75,128], index: 1, kind: input, shape index: {}]   ;;  %s4265_s2 = inlined_call_operand.vmem [shape: f32[1,128], index: 2, kind: input, shape index: {}]   ;;  %s4266_s3 = inlined_call_operand.vmem [shape: bf16[392,128], index: 3, kind: output, shape index: {}]  }
   0x1   :  { %s3385_s14 = smov 0  }
   0x2 LB: > { %s3397_s15 = sadd.s32 4294967295, %s3292_s14   ;;  %s3400_s16 = sadd.s32 1, %s3292_s14   ;;  %s3292_s14 = sphi %s3385_s14, %s4308_s14   ;;  %s3288_s13 = sphi %s3383_s13, %s4307_s13   ;;  %s3284_s12 = sphi %s3381_s12, %s4306_s12  }
   0x3   : > { %s17_s17 = ssub.s32 %s3292_s14, %s3400_s16  ;;  %s20_s18 = sadd.s32 1, %s3288_s13 }
   0x4   : > { %p18_p0 = scmp.eq.s32.totalorder %s17_s17, 0  ;;  %p27_p1 = scmp.ne.s32.totalorder %s3288_s13, %s3284_s12 }
   0x5   : > { %p28_p2 = scmp.eq.s32.totalorder %s3292_s14, 0  ;;  %p99_p3 = scmp.eq.s32.totalorder %s3397_s15, 1 }
   0x6   : > { %s3410_s19 = scalar_select %p18_p0, %s3288_s13, %s20_s18  }
   0x7   : > { %p29_p4 = por %p28_p2, %p27_p1  ;;  %p3412_p5 = por %p99_p3, %p27_p1 }
   0x8   : > { %p2329_p6 = scmp.ge.s32.totalorder %s3292_s14, 2 }
   0xa   : > { %127 = sbr.rel (%p2329_p6) target bundleno = 119 (0x77), region = 24 }
  0x11   : > { %130 = sbr.rel (!%p29_p4) target bundleno = 119 (0x77), region = 28  ;;  %s132_s21 = sand.u32 (%p29_p4), 1, %s3288_s13  }
  0x12   : > { %s135_s22 = smul.u32 (%p29_p4), 25, %s3292_s14 }
  0x13   : > { %s2986_s23 = smul.u32 (%p29_p4), 400, %s132_s21 }
  0x14   : > { %s136_s24 = ssub.s32 (%p29_p4), 49, %s135_s22  ;;  %s2566_s25 = smul.u32 (%p29_p4), 100, %s3292_s14 }
  0x15   : > { %p137_p7 = scmp.lt.s32.totalorder (%p29_p4), %s136_s24, 25  ;;  %s3428_s30 = scalar_lea.vmem (%p29_p4), [#allocation2], %s2986_s23  }
  0x16   : > { %s3423_s28 = scalar_lea.vmem (%p29_p4), %s4263_s0, %s2566_s25  }
  0x18   : > { %s4310_s24 = smov (!%p137_p7, %s136_s24), 25 }
  0x19   : > { %s2330_s29 = sshll.u32 %s4310_s24, 8 }
  0x1a   : > { %p2333_p8 = scmp.eq.s32.totalorder %s2330_s29, 0 }
  0x1b   : > { %s3431_s4 = sshrl.u32 (!%p2333_p8), %s4310_s24, 4 }
  0x1c   : > { %145 = sbr.rel (%p2333_p8) target bundleno = 119 (0x77), region = 32  ;;  %p2334_p9 = scmp.le.s32.totalorder (!%p2333_p8), %s3431_s4, 0 }
  0x23   : > { %2255 = sbr.rel (%p2334_p9) target bundleno = 94 (0x5e), region = 196  ;;  %s4270_s5 = smov (!%p2334_p9), %s3428_s30 }
  0x24   : > { %s4271_s6 = smov (!%p2334_p9), %s3423_s28  ;;  %s3440_s7 = smov (!%p2334_p9), 0  }
  0x25   : > { %s3442_s8 = smov (!%p2334_p9), 0  }
  0x2a LB: >> { %v161_v0 = vld [vmem:[%s3300_s6] sm:$0xf]  ;;  %v163_v1 = vld [vmem:[%s3300_s6 + $0x4] sm:$0xf]  ;;  %v165_v2 = vld [vmem:[%s3300_s6 + $0x8] sm:$0xf]  ;;  %s3308_s8 = sphi %s3442_s8, %s155_s8   ;;  %s3304_s7 = sphi %s3440_s7, %s4272_s7   ;;  %s3300_s6 = sphi %s4271_s6, %s294_s6   ;;  %s3296_s5 = sphi %s4270_s5, %s295_s5  }
  0x2b   : >> { %162 = vst [vmem:[%s3296_s5] sm:$0xf] %v161_v0  ;;  %164 = vst [vmem:[%s3296_s5 + $0x4] sm:$0xf] %v163_v1  ;;  %v167_v3 = vld [vmem:[%s3300_s6 + $0xc] sm:$0xf]  ;;  %s289_s9 = sadd.s32 1, %s3304_s7 }
  0x2c   : >> { %166 = vst [vmem:[%s3296_s5 + $0x8] sm:$0xf] %v165_v2  ;;  %v169_v4 = vld [vmem:[%s3300_s6 + $0x10] sm:$0xf]  ;;  %v171_v5 = vld [vmem:[%s3300_s6 + $0x14] sm:$0xf]  ;;  %p290_p10 = scmp.ge.s32.totalorder %s289_s9, %s3431_s4 }
  0x2d   : >> { %168 = vst [vmem:[%s3296_s5 + $0xc] sm:$0xf] %v167_v3  ;;  %170 = vst [vmem:[%s3296_s5 + $0x10] sm:$0xf] %v169_v4  ;;  %v173_v6 = vld [vmem:[%s3300_s6 + $0x18] sm:$0xf] }
  0x2e   : >> { %172 = vst [vmem:[%s3296_s5 + $0x14] sm:$0xf] %v171_v5  ;;  %v175_v7 = vld [vmem:[%s3300_s6 + $0x1c] sm:$0xf]  ;;  %v177_v8 = vld [vmem:[%s3300_s6 + $0x20] sm:$0xf] }
  0x2f   : >> { %174 = vst [vmem:[%s3296_s5 + $0x18] sm:$0xf] %v173_v6  ;;  %176 = vst [vmem:[%s3296_s5 + $0x1c] sm:$0xf] %v175_v7  ;;  %v179_v9 = vld [vmem:[%s3300_s6 + $0x24] sm:$0xf] }
  0x30   : >> { %178 = vst [vmem:[%s3296_s5 + $0x20] sm:$0xf] %v177_v8  ;;  %v181_v10 = vld [vmem:[%s3300_s6 + $0x28] sm:$0xf]  ;;  %v183_v11 = vld [vmem:[%s3300_s6 + $0x2c] sm:$0xf] }
  0x31   : >> { %180 = vst [vmem:[%s3296_s5 + $0x24] sm:$0xf] %v179_v9  ;;  %182 = vst [vmem:[%s3296_s5 + $0x28] sm:$0xf] %v181_v10  ;;  %v185_v12 = vld [vmem:[%s3300_s6 + $0x30] sm:$0xf] }
  0x32   : >> { %184 = vst [vmem:[%s3296_s5 + $0x2c] sm:$0xf] %v183_v11  ;;  %v187_v13 = vld [vmem:[%s3300_s6 + $0x34] sm:$0xf]  ;;  %v189_v14 = vld [vmem:[%s3300_s6 + $0x38] sm:$0xf] }
  0x33   : >> { %186 = vst [vmem:[%s3296_s5 + $0x30] sm:$0xf] %v185_v12  ;;  %188 = vst [vmem:[%s3296_s5 + $0x34] sm:$0xf] %v187_v13  ;;  %v191_v15 = vld [vmem:[%s3300_s6 + $0x3c] sm:$0xf] }
  0x34   : >> { %190 = vst [vmem:[%s3296_s5 + $0x38] sm:$0xf] %v189_v14  ;;  %v193_v16 = vld [vmem:[%s3300_s6 + $0xc4] sm:$0xf]  ;;  %v195_v17 = vld [vmem:[%s3300_s6 + $0xc8] sm:$0xf] }
  0x35   : >> { %192 = vst [vmem:[%s3296_s5 + $0x3c] sm:$0xf] %v191_v15  ;;  %194 = vst [vmem:[%s3296_s5 + $0x64] sm:$0xf] %v193_v16  ;;  %v197_v18 = vld [vmem:[%s3300_s6 + $0xcc] sm:$0xf] }
  0x36   : >> { %196 = vst [vmem:[%s3296_s5 + $0x68] sm:$0xf] %v195_v17  ;;  %v199_v19 = vld [vmem:[%s3300_s6 + $0xd0] sm:$0xf]  ;;  %v201_v20 = vld [vmem:[%s3300_s6 + $0xd4] sm:$0xf] }
  0x37   : >> { %198 = vst [vmem:[%s3296_s5 + $0x6c] sm:$0xf] %v197_v18  ;;  %200 = vst [vmem:[%s3296_s5 + $0x70] sm:$0xf] %v199_v19  ;;  %v203_v21 = vld [vmem:[%s3300_s6 + $0xd8] sm:$0xf] }
  0x38   : >> { %202 = vst [vmem:[%s3296_s5 + $0x74] sm:$0xf] %v201_v20  ;;  %v205_v22 = vld [vmem:[%s3300_s6 + $0xdc] sm:$0xf]  ;;  %v207_v23 = vld [vmem:[%s3300_s6 + $0xe0] sm:$0xf] }
  0x39   : >> { %204 = vst [vmem:[%s3296_s5 + $0x78] sm:$0xf] %v203_v21  ;;  %206 = vst [vmem:[%s3296_s5 + $0x7c] sm:$0xf] %v205_v22  ;;  %v209_v24 = vld [vmem:[%s3300_s6 + $0xe4] sm:$0xf] }
  0x3a   : >> { %208 = vst [vmem:[%s3296_s5 + $0x80] sm:$0xf] %v207_v23  ;;  %v211_v25 = vld [vmem:[%s3300_s6 + $0xe8] sm:$0xf]  ;;  %v213_v26 = vld [vmem:[%s3300_s6 + $0xec] sm:$0xf] }
  0x3b   : >> { %210 = vst [vmem:[%s3296_s5 + $0x84] sm:$0xf] %v209_v24  ;;  %212 = vst [vmem:[%s3296_s5 + $0x88] sm:$0xf] %v211_v25  ;;  %v215_v27 = vld [vmem:[%s3300_s6 + $0xf0] sm:$0xf] }
  0x3c   : >> { %214 = vst [vmem:[%s3296_s5 + $0x8c] sm:$0xf] %v213_v26  ;;  %v217_v28 = vld [vmem:[%s3300_s6 + $0xf4] sm:$0xf]  ;;  %v219_v29 = vld [vmem:[%s3300_s6 + $0xf8] sm:$0xf] }
  0x3d   : >> { %216 = vst [vmem:[%s3296_s5 + $0x90] sm:$0xf] %v215_v27  ;;  %218 = vst [vmem:[%s3296_s5 + $0x94] sm:$0xf] %v217_v28  ;;  %v221_v30 = vld [vmem:[%s3300_s6 + $0xfc] sm:$0xf] }
  0x3e   : >> { %220 = vst [vmem:[%s3296_s5 + $0x98] sm:$0xf] %v219_v29  ;;  %v223_v31 = vld [vmem:[%s3300_s6 + $0x100] sm:$0xf]  ;;  %v225_v32 = vld [vmem:[%s3300_s6 + $0x188] sm:$0xf] }
  0x3f   : >> { %222 = vst [vmem:[%s3296_s5 + $0x9c] sm:$0xf] %v221_v30  ;;  %224 = vst [vmem:[%s3296_s5 + $0xa0] sm:$0xf] %v223_v31  ;;  %v227_v33 = vld [vmem:[%s3300_s6 + $0x18c] sm:$0xf] }
  0x40   : >> { %226 = vst [vmem:[%s3296_s5 + $0xc8] sm:$0xf] %v225_v32  ;;  %v229_v34 = vld [vmem:[%s3300_s6 + $0x190] sm:$0xf]  ;;  %v231_v35 = vld [vmem:[%s3300_s6 + $0x194] sm:$0xf] }
  0x41   : >> { %228 = vst [vmem:[%s3296_s5 + $0xcc] sm:$0xf] %v227_v33  ;;  %230 = vst [vmem:[%s3296_s5 + $0xd0] sm:$0xf] %v229_v34  ;;  %v233_v36 = vld [vmem:[%s3300_s6 + $0x198] sm:$0xf] }
  0x42   : >> { %232 = vst [vmem:[%s3296_s5 + $0xd4] sm:$0xf] %v231_v35  ;;  %v235_v37 = vld [vmem:[%s3300_s6 + $0x19c] sm:$0xf]  ;;  %v237_v38 = vld [vmem:[%s3300_s6 + $0x1a0] sm:$0xf] }
  0x43   : >> { %234 = vst [vmem:[%s3296_s5 + $0xd8] sm:$0xf] %v233_v36  ;;  %236 = vst [vmem:[%s3296_s5 + $0xdc] sm:$0xf] %v235_v37  ;;  %v239_v39 = vld [vmem:[%s3300_s6 + $0x1a4] sm:$0xf] }
  0x44   : >> { %238 = vst [vmem:[%s3296_s5 + $0xe0] sm:$0xf] %v237_v38  ;;  %v241_v40 = vld [vmem:[%s3300_s6 + $0x1a8] sm:$0xf]  ;;  %v243_v41 = vld [vmem:[%s3300_s6 + $0x1ac] sm:$0xf] }
  0x45   : >> { %240 = vst [vmem:[%s3296_s5 + $0xe4] sm:$0xf] %v239_v39  ;;  %242 = vst [vmem:[%s3296_s5 + $0xe8] sm:$0xf] %v241_v40  ;;  %v245_v42 = vld [vmem:[%s3300_s6 + $0x1b0] sm:$0xf] }
  0x46   : >> { %244 = vst [vmem:[%s3296_s5 + $0xec] sm:$0xf] %v243_v41  ;;  %v247_v43 = vld [vmem:[%s3300_s6 + $0x1b4] sm:$0xf]  ;;  %v249_v44 = vld [vmem:[%s3300_s6 + $0x1b8] sm:$0xf] }
  0x47   : >> { %246 = vst [vmem:[%s3296_s5 + $0xf0] sm:$0xf] %v245_v42  ;;  %248 = vst [vmem:[%s3296_s5 + $0xf4] sm:$0xf] %v247_v43  ;;  %v251_v45 = vld [vmem:[%s3300_s6 + $0x1bc] sm:$0xf] }
  0x48   : >> { %250 = vst [vmem:[%s3296_s5 + $0xf8] sm:$0xf] %v249_v44  ;;  %v253_v46 = vld [vmem:[%s3300_s6 + $0x1c0] sm:$0xf]  ;;  %v255_v47 = vld [vmem:[%s3300_s6 + $0x1c4] sm:$0xf] }
  0x49   : >> { %252 = vst [vmem:[%s3296_s5 + $0xfc] sm:$0xf] %v251_v45  ;;  %254 = vst [vmem:[%s3296_s5 + $0x100] sm:$0xf] %v253_v46  ;;  %v257_v48 = vld [vmem:[%s3300_s6 + $0x24c] sm:$0xf] }
  0x4a   : >> { %256 = vst [vmem:[%s3296_s5 + $0x104] sm:$0xf] %v255_v47  ;;  %v259_v49 = vld [vmem:[%s3300_s6 + $0x250] sm:$0xf]  ;;  %v261_v50 = vld [vmem:[%s3300_s6 + $0x254] sm:$0xf] }
  0x4b   : >> { %258 = vst [vmem:[%s3296_s5 + $0x12c] sm:$0xf] %v257_v48  ;;  %260 = vst [vmem:[%s3296_s5 + $0x130] sm:$0xf] %v259_v49  ;;  %v263_v51 = vld [vmem:[%s3300_s6 + $0x258] sm:$0xf] }
  0x4c   : >> { %262 = vst [vmem:[%s3296_s5 + $0x134] sm:$0xf] %v261_v50  ;;  %v265_v52 = vld [vmem:[%s3300_s6 + $0x25c] sm:$0xf]  ;;  %v267_v53 = vld [vmem:[%s3300_s6 + $0x260] sm:$0xf] }
  0x4d   : >> { %264 = vst [vmem:[%s3296_s5 + $0x138] sm:$0xf] %v263_v51  ;;  %266 = vst [vmem:[%s3296_s5 + $0x13c] sm:$0xf] %v265_v52  ;;  %v269_v54 = vld [vmem:[%s3300_s6 + $0x264] sm:$0xf] }
  0x4e   : >> { %268 = vst [vmem:[%s3296_s5 + $0x140] sm:$0xf] %v267_v53  ;;  %v271_v55 = vld [vmem:[%s3300_s6 + $0x268] sm:$0xf]  ;;  %v273_v56 = vld [vmem:[%s3300_s6 + $0x26c] sm:$0xf] }
  0x4f   : >> { %270 = vst [vmem:[%s3296_s5 + $0x144] sm:$0xf] %v269_v54  ;;  %272 = vst [vmem:[%s3296_s5 + $0x148] sm:$0xf] %v271_v55  ;;  %v275_v57 = vld [vmem:[%s3300_s6 + $0x270] sm:$0xf] }
  0x50   : >> { %274 = vst [vmem:[%s3296_s5 + $0x14c] sm:$0xf] %v273_v56  ;;  %v277_v58 = vld [vmem:[%s3300_s6 + $0x274] sm:$0xf]  ;;  %v279_v59 = vld [vmem:[%s3300_s6 + $0x278] sm:$0xf] }
  0x51   : >> { %276 = vst [vmem:[%s3296_s5 + $0x150] sm:$0xf] %v275_v57  ;;  %278 = vst [vmem:[%s3296_s5 + $0x154] sm:$0xf] %v277_v58  ;;  %v281_v60 = vld [vmem:[%s3300_s6 + $0x27c] sm:$0xf] }
  0x52   : >> { %280 = vst [vmem:[%s3296_s5 + $0x158] sm:$0xf] %v279_v59  ;;  %v283_v61 = vld [vmem:[%s3300_s6 + $0x280] sm:$0xf]  ;;  %v285_v62 = vld [vmem:[%s3300_s6 + $0x284] sm:$0xf] }
  0x53   : >> { %282 = vst [vmem:[%s3296_s5 + $0x15c] sm:$0xf] %v281_v60  ;;  %284 = vst [vmem:[%s3296_s5 + $0x160] sm:$0xf] %v283_v61  ;;  %v287_v63 = vld [vmem:[%s3300_s6 + $0x288] sm:$0xf] }
  0x54   : >> { %286 = vst [vmem:[%s3296_s5 + $0x164] sm:$0xf] %v285_v62  ;;  %288 = vst [vmem:[%s3296_s5 + $0x168] sm:$0xf] %v287_v63  ;;  %s4312_s9 = smov (%p290_p10, %s289_s9), 0  ;;  %s155_s8 = sadd.s32 1, %s3308_s8  }
  0x55   : >> { %s2335_s10 = sshll.u32 %s4312_s9, 6  ;;  %p154_p11 = scmp.ge.s32.totalorder %s155_s8, %s3431_s4 }
  0x56   : >> { %s294_s6 = scalar_lea.vmem %s3423_s28, %s2335_s10   ;;  %s295_s5 = scalar_lea.vmem %s3428_s30, %s2335_s10 [#allocation2]  }
  0x57   : >> { %s4272_s7 = smov %s4312_s9  ;;  %157 = sbr.rel (!%p154_p11) target bundleno = 42 (0x2a), region = 202 }
  0x5e PF: > { %s3599_s11 = sand.u32 15, %s4310_s24   ;;  %s2567_s17 = sshll.u32 %s3431_s4, 6 }
  0x5f   : > { %s3603_s18 = scalar_lea.vmem %s3423_s28, %s2567_s17   ;;  %s3606_s21 = scalar_lea.vmem %s3428_s30, %s2567_s17 [#allocation2]  }
  0x60   : > { %p2340_p12 = scmp.le.s32.totalorder %s3599_s11, 0 }
  0x61   : > { %s4273_s22 = smov (!%p2340_p12), %s3606_s21  ;;  %s4274_s23 = smov (!%p2340_p12), %s3603_s18 }
  0x62   : > { %2269 = sbr.rel (%p2340_p12) target bundleno = 119 (0x77), region = 207  ;;  %s3318_s25 = smov (!%p2340_p12), 0  }
  0x63   : > { %s3322_s26 = smov (!%p2340_p12), 0  }
  0x69 LB: >> { %v312_v0 = vld [vmem:[%s3316_s23] sm:$0xf]  ;;  %v314_v1 = vld [vmem:[%s3316_s23 + $0xc4] sm:$0xf]  ;;  %v316_v2 = vld [vmem:[%s3316_s23 + $0x188] sm:$0xf]  ;;  %s3324_s26 = sphi %s3322_s26, %s306_s26   ;;  %s3320_s25 = sphi %s3318_s25, %s3319_s25   ;;  %s3316_s23 = sphi %s4274_s23, %s325_s23   ;;  %s3312_s22 = sphi %s4273_s22, %s326_s22  }
  0x6a   : >> { %313 = vst [vmem:[%s3312_s22] sm:$0xf] %v312_v0  ;;  %315 = vst [vmem:[%s3312_s22 + $0x64] sm:$0xf] %v314_v1  ;;  %v318_v3 = vld [vmem:[%s3316_s23 + $0x24c] sm:$0xf]  ;;  %s320_s24 = sadd.s32 1, %s3320_s25 }
  0x6b   : >> { %317 = vst [vmem:[%s3312_s22 + $0xc8] sm:$0xf] %v316_v2  ;;  %319 = vst [vmem:[%s3312_s22 + $0x12c] sm:$0xf] %v318_v3  ;;  %p321_p13 = scmp.ge.s32.totalorder %s320_s24, %s3599_s11  ;;  %s306_s26 = sadd.s32 1, %s3324_s26  }
  0x6c   : >> { %p305_p0 = scmp.ge.s32.totalorder %s306_s26, %s3599_s11 }
  0x6d   : >> { %s4314_s24 = smov (%p321_p13, %s320_s24), 0 }
  0x6e   : >> { %s2341_s27 = sshll.u32 %s4314_s24, 2  ;;  %s3319_s25 = smov %s4314_s24  }
  0x6f   : >> { %s325_s23 = scalar_lea.vmem %s3603_s18, %s2341_s27   ;;  %s326_s22 = scalar_lea.vmem %s3606_s21, %s2341_s27 [#allocation2]  }
  0x70   : > { %308 = sbr.rel (!%p305_p0) target bundleno = 105 (0x69), region = 213 }
  0x77 PF: > { %p2343_p1 = scmp.ge.s32.totalorder %s3292_s14, 1  ;;  %p549_p2 = scmp.lt.s32.totalorder %s3292_s14, 3 }
  0x79   : > { %p550_p3 = pnand %p2343_p1, %p549_p2 }
  0x7b   : > { %553 = sbr.rel (%p550_p3) target bundleno = 652 (0x28c), region = 90 }
  0x82   : > { %v3145_v4 = vld [vmem:[%s4264_s1] sm:$0xff]   ;;  %v3358_v5 = vmov 0.0   ;;  %v3146_v6 = vld [vmem:[%s4264_s1 + $0x8] sm:$0xff]   ;;  %vm756_vm0 = vcmask 1044480   ;;  %s556_s14 = sand.u32 1, %s3284_s12   ;;  %v3147_v7 = vld [vmem:[%s4264_s1 + $0x10] sm:$0xff]  }
  0x83   : > { %2738 = vmatprep.subr.bf16.mxu0 %v3358_v5  ;;  %2800 = vmatprep.subr.bf16.mxu1 %v3358_v5  ;;  %s2987_s7 = smul.u32 400, %s556_s14  ;;  %vm757_vm1 = vcmask 1045504   ;;  %v3359_v8 = vmov 65535   ;;  %vm3360_vm2 = vmmov 0   ;;  %v3148_v10 = vld [vmem:[%s4264_s1 + $0x18] sm:$0xff]   ;;  %vm716_vm3 = vcmask 613376  }
  0x84   : > { %2739 = vmatpush3.bf16.msra.mxu0 %v3145_v4  ;;  %2801 = vmatpush3.bf16.msra.mxu1 %v3145_v4  ;;  %v758_v9 = vsel %vm756_vm0, 4294967295, %v3359_v8  ;;  %v3149_v11 = vld [vmem:[%s4264_s1 + $0x20] sm:$0x3f]   ;;  %s2988_s22 = smul.u32 100, %s556_s14 }
  0x85   : > { %2740 = vmatprep.subr.bf16.mxu0 %v3358_v5  ;;  %2802 = vmatprep.subr.bf16.mxu1 %v3358_v5  ;;  %s3652_s10 = scalar_lea.vmem [#allocation2], %s2987_s7  ;;  %v759_v12 = vsel %vm757_vm1, %v758_v9, 0  ;;  %s1956_s23 = smul.u32 (%p3412_p5), 25, %s3397_s15 }
  0x86   : > { %2748 = vmatprep.mubr.msk.bf16.mxu0 %vm3360_vm2, %v3358_v5  ;;  %2810 = vmatprep.mubr.msk.bf16.mxu1 %vm3360_vm2, %v3358_v5  ;;  %v761_v13 = vand.u32 %v3149_v11, %v759_v12  ;;  %v3150_v14 = vld [vmem:[%s3652_s10] sm:$0xff]   ;;  %v3152_v16 = vld [vmem:[%s3652_s10 + $0x8] sm:$0xff]   ;;  %v3154_v18 = vld [vmem:[%s3652_s10 + $0x10] sm:$0xff]   ;;  %s4046_s12 = scalar_lea.vmem [#allocation3], %s2988_s22   ;;  %s2594_s25 = smul.u32 (%p3412_p5), 100, %s3397_s15 }
  0x87   : > { %v3151_v15 = vld [vmem:[%s3652_s10 + $0x64] sm:$0xff]   ;;  %v3153_v17 = vld [vmem:[%s3652_s10 + $0x6c] sm:$0xff]   ;;  %v3155_v19 = vld [vmem:[%s3652_s10 + $0x74] sm:$0xff]   ;;  %s1957_s26 = ssub.s32 (%p3412_p5), 49, %s1956_s23 }
  0x88   : > { %2741 = vmatpush3.bf16.msra.mxu0 %v3146_v6  ;;  %2803 = vmatpush3.bf16.msra.mxu1 %v3146_v6  ;;  %v3156_v20 = vld [vmem:[%s3652_s10 + $0x18] sm:$0xff]   ;;  %v3158_v22 = vld [vmem:[%s3652_s10 + $0x20] sm:$0xff]   ;;  %v3160_v24 = vld [vmem:[%s3652_s10 + $0x28] sm:$0xff]   ;;  %p1958_p4 = scmp.lt.s32.totalorder (%p3412_p5), %s1957_s26, 25  ;;  %s4154_s28 = scalar_lea.vmem (%p3412_p5), %s4266_s3, %s2594_s25  }
  0x89   : > { %2742 = vmatprep.subr.bf16.mxu0 %v3358_v5  ;;  %2804 = vmatprep.subr.bf16.mxu1 %v3358_v5  ;;  %v3157_v21 = vld [vmem:[%s3652_s10 + $0x7c] sm:$0xff]   ;;  %v3159_v23 = vld [vmem:[%s3652_s10 + $0x84] sm:$0xff]   ;;  %v3161_v25 = vld [vmem:[%s3652_s10 + $0x8c] sm:$0xff]  }
  0x8a   : > { %v3162_v26 = vld [vmem:[%s3652_s10 + $0x30] sm:$0xff]   ;;  %v3164_v28 = vld [vmem:[%s3652_s10 + $0x38] sm:$0xff]   ;;  %v3166_v30 = vld [vmem:[%s3652_s10 + $0x40] sm:$0xff]  }
  0x8b   : > { %v3163_v27 = vld [vmem:[%s3652_s10 + $0x94] sm:$0xff]   ;;  %v3165_v29 = vld [vmem:[%s3652_s10 + $0x9c] sm:$0xff]   ;;  %v3167_v31 = vld [vmem:[%s3652_s10 + $0xa4] sm:$0xff]  }
  0x8c   : > { %2743 = vmatpush3.bf16.msra.mxu0 %v3147_v7  ;;  %2805 = vmatpush3.bf16.msra.mxu1 %v3147_v7  ;;  %v3168_v32 = vld [vmem:[%s3652_s10 + $0x48] sm:$0xff]   ;;  %v3170_v34 = vld [vmem:[%s3652_s10 + $0x50] sm:$0xff]   ;;  %v3172_v36 = vld [vmem:[%s3652_s10 + $0x58] sm:$0xff]  }
  0x8d   : > { %2744 = vmatprep.subr.bf16.mxu0 %v3358_v5  ;;  %2806 = vmatprep.subr.bf16.mxu1 %v3358_v5  ;;  %v3169_v33 = vld [vmem:[%s3652_s10 + $0xac] sm:$0xff]   ;;  %v3171_v35 = vld [vmem:[%s3652_s10 + $0xb4] sm:$0xff]   ;;  %v3173_v37 = vld [vmem:[%s3652_s10 + $0xbc] sm:$0xff]  }
  0x8e   : > { %v3174_v38 = vld [vmem:[%s3652_s10 + $0x60] ss:$0 sps:$4 sm:$0xff]   ;;  %v3175_v39 = vld [vmem:[%s3652_s10 + $0xc4] ss:$0 sps:$4 sm:$0xff]   ;;  %v3176_v40 = vld [vmem:[%s3652_s10 + $0xc8] sm:$0xff]  }
  0x8f   : > { %v3177_v41 = vld [vmem:[%s3652_s10 + $0x12c] sm:$0xff]   ;;  %v3179_v43 = vld [vmem:[%s3652_s10 + $0x134] sm:$0xff]   ;;  %v3181_v45 = vld [vmem:[%s3652_s10 + $0x13c] sm:$0xff]  }
  0x90   : > { %2745 = vmatpush3.bf16.msra.mxu0 %v3148_v10  ;;  %2807 = vmatpush3.bf16.msra.mxu1 %v3148_v10  ;;  %v3178_v42 = vld [vmem:[%s3652_s10 + $0xd0] sm:$0xff]   ;;  %v3180_v44 = vld [vmem:[%s3652_s10 + $0xd8] sm:$0xff]   ;;  %v3182_v46 = vld [vmem:[%s3652_s10 + $0xe0] sm:$0xff]  }
  0x91   : > { %2746 = vmatprep.subr.bf16.mxu0 %v3358_v5  ;;  %2808 = vmatprep.subr.bf16.mxu1 %v3358_v5  ;;  %v3183_v47 = vld [vmem:[%s3652_s10 + $0x144] sm:$0xff]   ;;  %v3185_v49 = vld [vmem:[%s3652_s10 + $0x14c] sm:$0xff]   ;;  %v3187_v51 = vld [vmem:[%s3652_s10 + $0x154] sm:$0xff]  }
  0x92   : > { %v3184_v48 = vld [vmem:[%s3652_s10 + $0xe8] sm:$0xff]   ;;  %v3186_v50 = vld [vmem:[%s3652_s10 + $0xf0] sm:$0xff]   ;;  %v3188_v52 = vld [vmem:[%s3652_s10 + $0xf8] sm:$0xff]  }
  0x93   : > { %v3189_v53 = vld [vmem:[%s3652_s10 + $0x15c] sm:$0xff]   ;;  %v3191_v55 = vld [vmem:[%s3652_s10 + $0x164] sm:$0xff]   ;;  %v3193_v57 = vld [vmem:[%s3652_s10 + $0x16c] sm:$0xff]  }
  0x94   : > { %2747 = vmatpush3.bf16.msra.mxu0 %v761_v13  ;;  %2809 = vmatpush3.bf16.msra.mxu1 %v761_v13  ;;  %v3190_v54 = vld [vmem:[%s3652_s10 + $0x100] sm:$0xff]   ;;  %v3192_v56 = vld [vmem:[%s3652_s10 + $0x108] sm:$0xff]   ;;  %v3194_v58 = vld [vmem:[%s3652_s10 + $0x110] sm:$0xff]  }
  0x95   : > { %2862 = vmatprep.subr.bf16.mxu0 %v3358_v5  ;;  %2924 = vmatprep.subr.bf16.mxu1 %v3358_v5  ;;  %v3195_v59 = vld [vmem:[%s3652_s10 + $0x174] sm:$0xff]   ;;  %v3197_v61 = vld [vmem:[%s3652_s10 + $0x17c] sm:$0xff]   ;;  %v3199_v63 = vld [vmem:[%s3652_s10 + $0x184] sm:$0xff]  }
  0x96   : > { %v3196_v60 = vld [vmem:[%s3652_s10 + $0x118] sm:$0xff]   ;;  %v3198_v62 = vld [vmem:[%s3652_s10 + $0x120] sm:$0xff]   ;;  %v3200_v0 = vld [vmem:[%s3652_s10 + $0x128] ss:$0 sps:$4 sm:$0xff]  }
  0x97   : > { %2749 = vmatmul.mubr.msk.bf16.vlgmr.msra.gmra.mrb[0].mxu0 %vm716_vm3, %v3150_v14  ;;  %2811 = vmatmul.mubr.msk.bf16.vlgmr.msra.gmra.mrb[0].mxu1 %vm716_vm3, %v3151_v15  ;;  %v3201_v1 = vld [vmem:[%s3652_s10 + $0x18c] ss:$0 sps:$4 sm:$0xff]  }
  0x98   : > { %2863 = vmatpush3.bf16.msra.mxu0 %v3145_v4  ;;  %2925 = vmatpush3.bf16.msra.mxu1 %v3145_v4 }
  0x99   : > { %2752 = vmatprep.mubr.msk.bf16.mxu0 %vm3360_vm2, %v3358_v5  ;;  %2814 = vmatprep.mubr.msk.bf16.mxu1 %vm3360_vm2, %v3358_v5 }
  0x9a   : > { %2864 = vmatprep.subr.bf16.mxu0 %v3358_v5  ;;  %2926 = vmatprep.subr.bf16.mxu1 %v3358_v5 }
  0x9c   : > { %2865 = vmatpush3.bf16.msra.mxu0 %v3146_v6  ;;  %2927 = vmatpush3.bf16.msra.mxu1 %v3146_v6 }
  0x9d   : > { %2866 = vmatprep.subr.bf16.mxu0 %v3358_v5  ;;  %2928 = vmatprep.subr.bf16.mxu1 %v3358_v5 }
  0x9f   : > { %2753 = vmatmul.mubr.msk.bf16.gmra.mrb[4].mxu0 %vm716_vm3, %v3152_v16  ;;  %2815 = vmatmul.mubr.msk.bf16.gmra.mrb[4].mxu1 %vm716_vm3, %v3153_v17 }
  0xa0   : > { %2756 = vmatprep.mubr.msk.bf16.mxu0 %vm3360_vm2, %v3358_v5  ;;  %2818 = vmatprep.mubr.msk.bf16.mxu1 %vm3360_vm2, %v3358_v5 }
  0xa1   : > { %2867 = vmatpush3.bf16.msra.mxu0 %v3147_v7  ;;  %2929 = vmatpush3.bf16.msra.mxu1 %v3147_v7 }
  0xa2   : > { %2868 = vmatprep.subr.bf16.mxu0 %v3358_v5  ;;  %2930 = vmatprep.subr.bf16.mxu1 %v3358_v5 }
  0xa5   : > { %2869 = vmatpush3.bf16.msra.mxu0 %v3148_v10  ;;  %2931 = vmatpush3.bf16.msra.mxu1 %v3148_v10 }
  0xa6   : > { %2870 = vmatprep.subr.bf16.mxu0 %v3358_v5  ;;  %2932 = vmatprep.subr.bf16.mxu1 %v3358_v5 }
  0xa7   : > { %2757 = vmatmul.mubr.msk.bf16.gmra.mrb[8].mxu0 %vm716_vm3, %v3154_v18  ;;  %2819 = vmatmul.mubr.msk.bf16.gmra.mrb[8].mxu1 %vm716_vm3, %v3155_v19 }
  0xa8   : > { %2760 = vmatprep.mubr.msk.bf16.mxu0 %vm3360_vm2, %v3358_v5  ;;  %2822 = vmatprep.mubr.msk.bf16.mxu1 %vm3360_vm2, %v3358_v5 }
  0xa9   : > { %2871 = vmatpush3.bf16.msra.mxu0 %v761_v13  ;;  %2933 = vmatpush3.bf16.msra.mxu1 %v761_v13 }
  0xaf   : > { %2761 = vmatmul.mubr.msk.bf16.gmra.mrb[12].mxu0 %vm716_vm3, %v3156_v20  ;;  %2823 = vmatmul.mubr.msk.bf16.gmra.mrb[12].mxu1 %vm716_vm3, %v3157_v21 }
  0xb0   : > { %2764 = vmatprep.mubr.msk.bf16.mxu0 %vm3360_vm2, %v3358_v5  ;;  %2826 = vmatprep.mubr.msk.bf16.mxu1 %vm3360_vm2, %v3358_v5 }
  0xb7   : > { %2765 = vmatmul.mubr.msk.bf16.gmra.mrb[16].mxu0 %vm716_vm3, %v3158_v22  ;;  %2827 = vmatmul.mubr.msk.bf16.gmra.mrb[16].mxu1 %vm716_vm3, %v3159_v23 }
  0xb8   : > { %2768 = vmatprep.mubr.msk.bf16.mxu0 %vm3360_vm2, %v3358_v5  ;;  %2830 = vmatprep.mubr.msk.bf16.mxu1 %vm3360_vm2, %v3358_v5 }
  0xbf   : > { %2769 = vmatmul.mubr.msk.bf16.gmra.mrb[20].mxu0 %vm716_vm3, %v3160_v24  ;;  %2831 = vmatmul.mubr.msk.bf16.gmra.mrb[20].mxu1 %vm716_vm3, %v3161_v25 }
  0xc0   : > { %2772 = vmatprep.mubr.msk.bf16.mxu0 %vm3360_vm2, %v3358_v5  ;;  %2834 = vmatprep.mubr.msk.bf16.mxu1 %vm3360_vm2, %v3358_v5 }
  0xc7   : > { %2773 = vmatmul.mubr.msk.bf16.gmra.mrb[24].mxu0 %vm716_vm3, %v3162_v26  ;;  %2835 = vmatmul.mubr.msk.bf16.gmra.mrb[24].mxu1 %vm716_vm3, %v3163_v27 }
  0xc8   : > { %2776 = vmatprep.mubr.msk.bf16.mxu0 %vm3360_vm2, %v3358_v5  ;;  %2838 = vmatprep.mubr.msk.bf16.mxu1 %vm3360_vm2, %v3358_v5 }
  0xcf   : > { %2777 = vmatmul.mubr.msk.bf16.gmra.mrb[28].mxu0 %vm716_vm3, %v3164_v28  ;;  %2839 = vmatmul.mubr.msk.bf16.gmra.mrb[28].mxu1 %vm716_vm3, %v3165_v29 }
  0xd0   : > { %2780 = vmatprep.mubr.msk.bf16.mxu0 %vm3360_vm2, %v3358_v5  ;;  %2842 = vmatprep.mubr.msk.bf16.mxu1 %vm3360_vm2, %v3358_v5 }
  0xd7   : > { %2781 = vmatmul.mubr.msk.bf16.gmra.mrb[32].mxu0 %vm716_vm3, %v3166_v30  ;;  %2843 = vmatmul.mubr.msk.bf16.gmra.mrb[32].mxu1 %vm716_vm3, %v3167_v31 }
  0xd8   : > { %2784 = vmatprep.mubr.msk.bf16.mxu0 %vm3360_vm2, %v3358_v5  ;;  %2846 = vmatprep.mubr.msk.bf16.mxu1 %vm3360_vm2, %v3358_v5 }
  0xdf   : > { %2785 = vmatmul.mubr.msk.bf16.gmra.mrb[36].mxu0 %vm716_vm3, %v3168_v32  ;;  %2847 = vmatmul.mubr.msk.bf16.gmra.mrb[36].mxu1 %vm716_vm3, %v3169_v33 }
  0xe0   : > { %2788 = vmatprep.mubr.msk.bf16.mxu0 %vm3360_vm2, %v3358_v5  ;;  %2850 = vmatprep.mubr.msk.bf16.mxu1 %vm3360_vm2, %v3358_v5 }
  0xe7   : > { %2789 = vmatmul.mubr.msk.bf16.gmra.mrb[40].mxu0 %vm716_vm3, %v3170_v34  ;;  %2851 = vmatmul.mubr.msk.bf16.gmra.mrb[40].mxu1 %vm716_vm3, %v3171_v35 }
  0xe8   : > { %2792 = vmatprep.mubr.msk.bf16.mxu0 %vm3360_vm2, %v3358_v5  ;;  %2854 = vmatprep.mubr.msk.bf16.mxu1 %vm3360_vm2, %v3358_v5 }
  0xef   : > { %2793 = vmatmul.mubr.msk.bf16.gmra.mrb[44].mxu0 %vm716_vm3, %v3172_v36  ;;  %2855 = vmatmul.mubr.msk.bf16.gmra.mrb[44].mxu1 %vm716_vm3, %v3173_v37 }
  0xf0   : > { %2796 = vmatprep.mubr.msk.bf16.mxu0 %vm3360_vm2, %v3358_v5  ;;  %2858 = vmatprep.mubr.msk.bf16.mxu1 %vm3360_vm2, %v3358_v5 }
  0xf7   : > { %2797 = vmatmul.mubr.msk.bf16.gmra.mrb[48].mxu0 %vm716_vm3, %v3174_v38  ;;  %2859 = vmatmul.mubr.msk.bf16.gmra.mrb[48].mxu1 %vm716_vm3, %v3175_v39 }
  0xf8   : > { %2872 = vmatprep.mubr.msk.bf16.mxu0 %vm3360_vm2, %v3358_v5  ;;  %2934 = vmatprep.mubr.msk.bf16.mxu1 %vm3360_vm2, %v3358_v5 }
  0xff   : > { %2873 = vmatmul.mubr.msk.bf16.vlgmr.msra.gmra.mrb[52].mxu0 %vm716_vm3, %v3176_v40  ;;  %2935 = vmatmul.mubr.msk.bf16.vlgmr.msra.gmra.mrb[52].mxu1 %vm716_vm3, %v3177_v41 }
 0x100   : > { %2876 = vmatprep.mubr.msk.bf16.mxu0 %vm3360_vm2, %v3358_v5  ;;  %2938 = vmatprep.mubr.msk.bf16.mxu1 %vm3360_vm2, %v3358_v5 }
 0x107   : > { %2877 = vmatmul.mubr.msk.bf16.gmra.mrb[56].mxu0 %vm716_vm3, %v3178_v42  ;;  %2939 = vmatmul.mubr.msk.bf16.gmra.mrb[56].mxu1 %vm716_vm3, %v3179_v43 }
 0x108   : > { %2880 = vmatprep.mubr.msk.bf16.mxu0 %vm3360_vm2, %v3358_v5  ;;  %2942 = vmatprep.mubr.msk.bf16.mxu1 %vm3360_vm2, %v3358_v5 }
 0x10f   : > { %2881 = vmatmul.mubr.msk.bf16.gmra.mrb[60].mxu0 %vm716_vm3, %v3180_v44  ;;  %2943 = vmatmul.mubr.msk.bf16.gmra.mrb[60].mxu1 %vm716_vm3, %v3181_v45 }
 0x110   : > { %2884 = vmatprep.mubr.msk.bf16.mxu0 %vm3360_vm2, %v3358_v5  ;;  %2946 = vmatprep.mubr.msk.bf16.mxu1 %vm3360_vm2, %v3358_v5 }
 0x117   : > { %2885 = vmatmul.mubr.msk.bf16.gmra.mrb[64].mxu0 %vm716_vm3, %v3182_v46  ;;  %2947 = vmatmul.mubr.msk.bf16.gmra.mrb[64].mxu1 %vm716_vm3, %v3183_v47 }
 0x118   : > { %2888 = vmatprep.mubr.msk.bf16.mxu0 %vm3360_vm2, %v3358_v5  ;;  %2950 = vmatprep.mubr.msk.bf16.mxu1 %vm3360_vm2, %v3358_v5 }
 0x11f   : > { %2889 = vmatmul.mubr.msk.bf16.gmra.mrb[68].mxu0 %vm716_vm3, %v3184_v48  ;;  %2951 = vmatmul.mubr.msk.bf16.gmra.mrb[68].mxu1 %vm716_vm3, %v3185_v49 }
 0x120   : > { %2892 = vmatprep.mubr.msk.bf16.mxu0 %vm3360_vm2, %v3358_v5  ;;  %2954 = vmatprep.mubr.msk.bf16.mxu1 %vm3360_vm2, %v3358_v5 }
 0x127   : > { %2893 = vmatmul.mubr.msk.bf16.gmra.mrb[72].mxu0 %vm716_vm3, %v3186_v50  ;;  %2955 = vmatmul.mubr.msk.bf16.gmra.mrb[72].mxu1 %vm716_vm3, %v3187_v51 }
 0x128   : > { %2896 = vmatprep.mubr.msk.bf16.mxu0 %vm3360_vm2, %v3358_v5  ;;  %2958 = vmatprep.mubr.msk.bf16.mxu1 %vm3360_vm2, %v3358_v5 }
 0x12f   : > { %2897 = vmatmul.mubr.msk.bf16.gmra.mrb[76].mxu0 %vm716_vm3, %v3188_v52  ;;  %2959 = vmatmul.mubr.msk.bf16.gmra.mrb[76].mxu1 %vm716_vm3, %v3189_v53 }
 0x130   : > { %2900 = vmatprep.mubr.msk.bf16.mxu0 %vm3360_vm2, %v3358_v5  ;;  %2962 = vmatprep.mubr.msk.bf16.mxu1 %vm3360_vm2, %v3358_v5 }
 0x137   : > { %2901 = vmatmul.mubr.msk.bf16.gmra.mrb[80].mxu0 %vm716_vm3, %v3190_v54  ;;  %2963 = vmatmul.mubr.msk.bf16.gmra.mrb[80].mxu1 %vm716_vm3, %v3191_v55 }
 0x138   : > { %2904 = vmatprep.mubr.msk.bf16.mxu0 %vm3360_vm2, %v3358_v5  ;;  %2966 = vmatprep.mubr.msk.bf16.mxu1 %vm3360_vm2, %v3358_v5 }
 0x13f   : > { %2905 = vmatmul.mubr.msk.bf16.gmra.mrb[84].mxu0 %vm716_vm3, %v3192_v56  ;;  %2967 = vmatmul.mubr.msk.bf16.gmra.mrb[84].mxu1 %vm716_vm3, %v3193_v57 }
 0x140   : > { %2908 = vmatprep.mubr.msk.bf16.mxu0 %vm3360_vm2, %v3358_v5  ;;  %2970 = vmatprep.mubr.msk.bf16.mxu1 %vm3360_vm2, %v3358_v5 }
 0x147   : > { %2909 = vmatmul.mubr.msk.bf16.gmra.mrb[88].mxu0 %vm716_vm3, %v3194_v58  ;;  %2971 = vmatmul.mubr.msk.bf16.gmra.mrb[88].mxu1 %vm716_vm3, %v3195_v59 }
 0x148   : > { %2912 = vmatprep.mubr.msk.bf16.mxu0 %vm3360_vm2, %v3358_v5  ;;  %2974 = vmatprep.mubr.msk.bf16.mxu1 %vm3360_vm2, %v3358_v5 }
 0x14f   : > { %2913 = vmatmul.mubr.msk.bf16.gmra.mrb[92].mxu0 %vm716_vm3, %v3196_v60  ;;  %2975 = vmatmul.mubr.msk.bf16.gmra.mrb[92].mxu1 %vm716_vm3, %v3197_v61 }
 0x150   : > { %2916 = vmatprep.mubr.msk.bf16.mxu0 %vm3360_vm2, %v3358_v5  ;;  %2978 = vmatprep.mubr.msk.bf16.mxu1 %vm3360_vm2, %v3358_v5 }
 0x157   : > { %2917 = vmatmul.mubr.msk.bf16.gmra.mrb[96].mxu0 %vm716_vm3, %v3198_v62  ;;  %2979 = vmatmul.mubr.msk.bf16.gmra.mrb[96].mxu1 %vm716_vm3, %v3199_v63 }
 0x158   : > { %2920 = vmatprep.mubr.msk.bf16.mxu0 %vm3360_vm2, %v3358_v5  ;;  %2982 = vmatprep.mubr.msk.bf16.mxu1 %vm3360_vm2, %v3358_v5  ;;  %v4031_v5 = vld [vmem:[%s4265_s2] ss:$0 sm:$0xff] }
 0x15f   : > { %2921 = vmatmul.mubr.msk.bf16.gmra.mrb[100].mxu0 %vm716_vm3, %v3200_v0  ;;  %2983 = vmatmul.mubr.msk.bf16.gmra.mrb[100].mxu1 %vm716_vm3, %v3201_v1 }
 0x16a   : > { %v3875_v2 = vpop.f32.mrb[0].mxu0  ;;  %v3877_v3 = vpop.f32.mrb[0].mxu1 }
 0x16b   : > { %v1163_v4 = vmax.f32 %v3875_v2, %v3877_v3  ;;  %v2750_v6 = vpop.f32.mrb[1].mxu0  ;;  %v2812_v7 = vpop.f32.mrb[1].mxu1 }
 0x16c   : > { %v3881_v8 = vpop.f32.mrb[2].mxu0  ;;  %v3883_v9 = vpop.f32.mrb[2].mxu1 }
 0x16d   : > { %v2751_v10 = vpop.f32.mrb[3].mxu0  ;;  %v2813_v11 = vpop.f32.mrb[3].mxu1 }
 0x172   : > { %v3887_v12 = vpop.f32.mrb[4].mxu0  ;;  %v3889_v13 = vpop.f32.mrb[4].mxu1 }
 0x173   : > { %v2754_v15 = vpop.f32.mrb[5].mxu0  ;;  %v2816_v16 = vpop.f32.mrb[5].mxu1 }
 0x174   : > { %v3893_v17 = vpop.f32.mrb[6].mxu0  ;;  %v3895_v18 = vpop.f32.mrb[6].mxu1 }
 0x175   : > { %v2755_v20 = vpop.f32.mrb[7].mxu0  ;;  %v2817_v21 = vpop.f32.mrb[7].mxu1 }
 0x17a   : > { %v3899_v22 = vpop.f32.mrb[8].mxu0  ;;  %v3901_v23 = vpop.f32.mrb[8].mxu1 }
 0x17b   : > { %v2758_v25 = vpop.f32.mrb[9].mxu0  ;;  %v2820_v26 = vpop.f32.mrb[9].mxu1 }
 0x17c   : > { %v3905_v27 = vpop.f32.mrb[10].mxu0  ;;  %v3907_v28 = vpop.f32.mrb[10].mxu1 }
 0x17d   : > { %v2759_v30 = vpop.f32.mrb[11].mxu0  ;;  %v2821_v31 = vpop.f32.mrb[11].mxu1 }
 0x182   : > { %v3911_v32 = vpop.f32.mrb[12].mxu0  ;;  %v3913_v33 = vpop.f32.mrb[12].mxu1 }
 0x183   : > { %v2762_v35 = vpop.f32.mrb[13].mxu0  ;;  %v2824_v36 = vpop.f32.mrb[13].mxu1 }
 0x184   : > { %v3917_v37 = vpop.f32.mrb[14].mxu0  ;;  %v3919_v38 = vpop.f32.mrb[14].mxu1 }
 0x185   : > { %v2763_v40 = vpop.f32.mrb[15].mxu0  ;;  %v2825_v41 = vpop.f32.mrb[15].mxu1 }
 0x18a   : > { %v3923_v42 = vpop.f32.mrb[16].mxu0  ;;  %v3925_v43 = vpop.f32.mrb[16].mxu1 }
 0x18b   : > { %v2766_v45 = vpop.f32.mrb[17].mxu0  ;;  %v2828_v46 = vpop.f32.mrb[17].mxu1 }
 0x18c   : > { %v3929_v47 = vpop.f32.mrb[18].mxu0  ;;  %v3931_v48 = vpop.f32.mrb[18].mxu1 }
 0x18d   : > { %v2767_v50 = vpop.f32.mrb[19].mxu0  ;;  %v2829_v51 = vpop.f32.mrb[19].mxu1 }
 0x192   : > { %v3935_v52 = vpop.f32.mrb[20].mxu0  ;;  %v3937_v53 = vpop.f32.mrb[20].mxu1 }
 0x193   : > { %v2770_v55 = vpop.f32.mrb[21].mxu0  ;;  %v2832_v56 = vpop.f32.mrb[21].mxu1 }
 0x194   : > { %v3941_v57 = vpop.f32.mrb[22].mxu0  ;;  %v3943_v58 = vpop.f32.mrb[22].mxu1 }
 0x195   : > { %v2771_v60 = vpop.f32.mrb[23].mxu0  ;;  %v2833_v61 = vpop.f32.mrb[23].mxu1 }
 0x19a   : > { %v3947_v62 = vpop.f32.mrb[24].mxu0  ;;  %v3949_v63 = vpop.f32.mrb[24].mxu1 }
 0x19b   : > { %v2774_v1 = vpop.f32.mrb[25].mxu0  ;;  %v2836_v6 = vpop.f32.mrb[25].mxu1 }
 0x19c   : > { %v3953_v7 = vpop.f32.mrb[26].mxu0  ;;  %v3955_v10 = vpop.f32.mrb[26].mxu1 }
 0x19d   : > { %v2775_v15 = vpop.f32.mrb[27].mxu0  ;;  %v2837_v16 = vpop.f32.mrb[27].mxu1 }
 0x1a2   : > { %v3959_v20 = vpop.f32.mrb[28].mxu0  ;;  %v3961_v21 = vpop.f32.mrb[28].mxu1 }
 0x1a3   : > { %v2778_v26 = vpop.f32.mrb[29].mxu0  ;;  %v2840_v30 = vpop.f32.mrb[29].mxu1 }
 0x1a4   : > { %v3965_v31 = vpop.f32.mrb[30].mxu0  ;;  %v3967_v35 = vpop.f32.mrb[30].mxu1 }
 0x1a5   : > { %v2779_v40 = vpop.f32.mrb[31].mxu0  ;;  %v2841_v41 = vpop.f32.mrb[31].mxu1 }
 0x1aa   : > { %v3971_v45 = vpop.f32.mrb[32].mxu0  ;;  %v3973_v46 = vpop.f32.mrb[32].mxu1 }
 0x1ab   : > { %v2782_v51 = vpop.f32.mrb[33].mxu0  ;;  %v2844_v55 = vpop.f32.mrb[33].mxu1 }
 0x1ac   : > { %v3977_v56 = vpop.f32.mrb[34].mxu0  ;;  %v3979_v60 = vpop.f32.mrb[34].mxu1 }
 0x1ad   : > { %v2783_v1 = vpop.f32.mrb[35].mxu0  ;;  %v2845_v6 = vpop.f32.mrb[35].mxu1 }
 0x1b2   : > { %v3983_v15 = vpop.f32.mrb[36].mxu0  ;;  %v3985_v16 = vpop.f32.mrb[36].mxu1 }
 0x1b3   : > { %v2786_v30 = vpop.f32.mrb[37].mxu0  ;;  %v2848_v40 = vpop.f32.mrb[37].mxu1 }
 0x1b4   : > { %v3989_v41 = vpop.f32.mrb[38].mxu0  ;;  %v3991_v51 = vpop.f32.mrb[38].mxu1 }
 0x1b5   : > { %v2787_v50 = vpop.f32.mrb[39].mxu0  ;;  %v2849_v61 = vpop.f32.mrb[39].mxu1 }
 0x1ba   : > { %v3995_v1 = vpop.f32.mrb[40].mxu0  ;;  %v3997_v6 = vpop.f32.mrb[40].mxu1 }
 0x1bb   : > { %v2790_v25 = vpop.f32.mrb[41].mxu0  ;;  %v2852_v26 = vpop.f32.mrb[41].mxu1 }
 0x1bc   : > { %v4001_v30 = vpop.f32.mrb[42].mxu0  ;;  %v4003_v40 = vpop.f32.mrb[42].mxu1 }
 0x1bd   : > { %v2791_v0 = vpop.f32.mrb[43].mxu0  ;;  %v2853_v55 = vpop.f32.mrb[43].mxu1 }
 0x1c2   : > { %v4007_v50 = vpop.f32.mrb[44].mxu0  ;;  %v4009_v61 = vpop.f32.mrb[44].mxu1 }
 0x1c3   : > { %v2794_v54 = vpop.f32.mrb[45].mxu0  ;;  %v2856_v36 = vpop.f32.mrb[45].mxu1 }
 0x1c4   : > { %v4013_v25 = vpop.f32.mrb[46].mxu0  ;;  %v4015_v26 = vpop.f32.mrb[46].mxu1 }
 0x1c5   : > { %v2795_v44 = vpop.f32.mrb[47].mxu0  ;;  %v2857_v11 = vpop.f32.mrb[47].mxu1 }
 0x1ca   : > { %v4019_v0 = vpop.f32.mrb[48].mxu0  ;;  %v4021_v55 = vpop.f32.mrb[48].mxu1 }
 0x1cb   : > { %4275 = vst [vmem:[#allocation4_spill] sm:$0xff] %v4019_v0  ;;  %4276 = vst [vmem:[#allocation5_spill] sm:$0xff] %v4021_v55  ;;  %v2798_v34 = vpop.f32.mrb[49].mxu0  ;;  %v2860_v59 = vpop.f32.mrb[49].mxu1 }
 0x1cc   : > { %v896_v54 = vpop.f32.mrb[50].mxu0  ;;  %v1160_v36 = vpop.f32.mrb[50].mxu1 }
 0x1cd   : > { %v2799_v29 = vpop.f32.mrb[51].mxu0  ;;  %v2861_v24 = vpop.f32.mrb[51].mxu1 }
 0x1ce   : > { %v4277_v29 = vmax.f32 %v3881_v8, %v3883_v9 }
 0x1d2   : > { %v1350_v19 = vpop.f32.mrb[52].mxu0  ;;  %v1639_v14 = vpop.f32.mrb[52].mxu1 }
 0x1d3   : > { %v1452_v44 = vmax.f32 %v1163_v4, %v1350_v19  ;;  %v2874_v11 = vpop.f32.mrb[53].mxu0  ;;  %v2936_v49 = vpop.f32.mrb[53].mxu1 }
 0x1d4   : > { %v1353_v34 = vpop.f32.mrb[54].mxu0  ;;  %v1642_v59 = vpop.f32.mrb[54].mxu1 }
 0x1d5   : > { %v1741_v54 = vmax.f32 %v1452_v44, %v1639_v14  ;;  %v1453_v24 = vmax.f32 %v4277_v29, %v1353_v34  ;;  %v2875_v36 = vpop.f32.mrb[55].mxu0  ;;  %v2937_v39 = vpop.f32.mrb[55].mxu1  ;;  %v4278_v14 = vmax.f32 %v3887_v12, %v3889_v13 }
 0x1d7   : > { %v1773_v55 = vadd.f32 %v4031_v5, %v1741_v54  ;;  %v1742_v2 = vmax.f32 %v1453_v24, %v1642_v59  ;;  %v4279_v59 = vmax.f32 %v3893_v17, %v3895_v18  ;;  %v4280_v17 = vmax.f32 %v3899_v22, %v3901_v23 }
 0x1d9   : > { %v1774_v3 = vadd.f32 %v4031_v5, %v1742_v2  ;;  %v1798_v49 = vmax.f32 %v1773_v55, 0.0 }
 0x1da   : > { %v1358_v4 = vpop.f32.mrb[56].mxu0  ;;  %v1647_v19 = vpop.f32.mrb[56].mxu1 }
 0x1db   : > { %v1799_v11 = vmax.f32 %v1774_v3, 0.0  ;;  %v1454_v44 = vmax.f32 %v4278_v14, %v1358_v4  ;;  %v2878_v0 = vpop.f32.mrb[57].mxu0  ;;  %v2940_v8 = vpop.f32.mrb[57].mxu1 }
 0x1dc   : > { %v1361_v9 = vpop.f32.mrb[58].mxu0  ;;  %v1650_v34 = vpop.f32.mrb[58].mxu1 }
 0x1dd   : > { %v2598_v39 = vpack.c.bf16 %v1799_v11, %v1798_v49  ;;  %v1743_v29 = vmax.f32 %v1454_v44, %v1647_v19  ;;  %v1455_v54 = vmax.f32 %v4279_v59, %v1361_v9  ;;  %v2879_v24 = vpop.f32.mrb[59].mxu0  ;;  %v2941_v36 = vpop.f32.mrb[59].mxu1  ;;  %v4281_v9 = vmax.f32 %v3905_v27, %v3907_v28 }
 0x1df   : > { %2599 = vst [vmem:[%s4046_s12] sm:$0xff] %v2598_v39   ;;  %v1775_v55 = vadd.f32 %v4031_v5, %v1743_v29  ;;  %v1744_v12 = vmax.f32 %v1455_v54, %v1650_v34 }
 0x1e1   : > { %v1776_v13 = vadd.f32 %v4031_v5, %v1744_v12  ;;  %v1800_v3 = vmax.f32 %v1775_v55, 0.0  ;;  %v4282_v12 = vmax.f32 %v3911_v32, %v3913_v33 }
 0x1e2   : > { %v1366_v0 = vpop.f32.mrb[60].mxu0  ;;  %v1655_v2 = vpop.f32.mrb[60].mxu1 }
 0x1e3   : > { %v1801_v4 = vmax.f32 %v1776_v13, 0.0  ;;  %v1456_v18 = vmax.f32 %v4280_v17, %v1366_v0  ;;  %v2882_v19 = vpop.f32.mrb[61].mxu0  ;;  %v2944_v49 = vpop.f32.mrb[61].mxu1  ;;  %v4283_v17 = vmax.f32 %v3917_v37, %v3919_v38 }
 0x1e4   : > { %v1369_v11 = vpop.f32.mrb[62].mxu0  ;;  %v1658_v14 = vpop.f32.mrb[62].mxu1 }
 0x1e5   : > { %v2603_v44 = vpack.c.bf16 %v1801_v4, %v1800_v3  ;;  %v1745_v8 = vmax.f32 %v1456_v18, %v1655_v2  ;;  %v1457_v34 = vmax.f32 %v4281_v9, %v1369_v11  ;;  %v2883_v39 = vpop.f32.mrb[63].mxu0  ;;  %v2945_v29 = vpop.f32.mrb[63].mxu1 }
 0x1e7   : > { %2655 = vst [vmem:[%s4046_s12 + $0x8] sm:$0xff] %v2603_v44   ;;  %v1777_v59 = vadd.f32 %v4031_v5, %v1745_v8  ;;  %v1746_v54 = vmax.f32 %v1457_v34, %v1658_v14  ;;  %v4284_v34 = vmax.f32 %v3923_v42, %v3925_v43 }
 0x1e9   : > { %v1778_v22 = vadd.f32 %v4031_v5, %v1746_v54  ;;  %v1802_v36 = vmax.f32 %v1777_v59, 0.0 }
 0x1ea   : > { %v1374_v23 = vpop.f32.mrb[64].mxu0  ;;  %v1663_v24 = vpop.f32.mrb[64].mxu1 }
 0x1eb   : > { %v1803_v55 = vmax.f32 %v1778_v22, 0.0  ;;  %v1458_v13 = vmax.f32 %v4282_v12, %v1374_v23  ;;  %v2886_v0 = vpop.f32.mrb[65].mxu0  ;;  %v2948_v27 = vpop.f32.mrb[65].mxu1  ;;  %v4285_v23 = vmax.f32 %v3929_v47, %v3931_v48 }
 0x1ec   : > { %v1377_v28 = vpop.f32.mrb[66].mxu0  ;;  %v1666_v2 = vpop.f32.mrb[66].mxu1 }
 0x1ed   : > { %v2608_v3 = vpack.c.bf16 %v1803_v55, %v1802_v36  ;;  %v1747_v4 = vmax.f32 %v1458_v13, %v1663_v24  ;;  %v1459_v18 = vmax.f32 %v4283_v17, %v1377_v28  ;;  %v2887_v19 = vpop.f32.mrb[67].mxu0  ;;  %v2949_v49 = vpop.f32.mrb[67].mxu1 }
 0x1ee   : > { %v4287_v49 = vmax.f32 %v3941_v57, %v3943_v58 }
 0x1ef   : > { %2656 = vst [vmem:[%s4046_s12 + $0x10] sm:$0xff] %v2608_v3   ;;  %v1779_v11 = vadd.f32 %v4031_v5, %v1747_v4  ;;  %v1748_v14 = vmax.f32 %v1459_v18, %v1666_v2  ;;  %v4286_v2 = vmax.f32 %v3935_v52, %v3937_v53 }
 0x1f1   : > { %v1780_v32 = vadd.f32 %v4031_v5, %v1748_v14  ;;  %v1804_v8 = vmax.f32 %v1779_v11, 0.0 }
 0x1f2   : > { %v1382_v33 = vpop.f32.mrb[68].mxu0  ;;  %v1671_v44 = vpop.f32.mrb[68].mxu1 }
 0x1f3   : > { %v1805_v9 = vmax.f32 %v1780_v32, 0.0  ;;  %v1460_v39 = vmax.f32 %v4284_v34, %v1382_v33  ;;  %v2890_v29 = vpop.f32.mrb[69].mxu0  ;;  %v2952_v37 = vpop.f32.mrb[69].mxu1 }
 0x1f4   : > { %v1385_v38 = vpop.f32.mrb[70].mxu0  ;;  %v1674_v59 = vpop.f32.mrb[70].mxu1 }
 0x1f5   : > { %v2613_v54 = vpack.c.bf16 %v1805_v9, %v1804_v8  ;;  %v1749_v22 = vmax.f32 %v1460_v39, %v1671_v44  ;;  %v1461_v24 = vmax.f32 %v4285_v23, %v1385_v38  ;;  %v2891_v36 = vpop.f32.mrb[71].mxu0  ;;  %v2953_v55 = vpop.f32.mrb[71].mxu1  ;;  %v4288_v39 = vmax.f32 %v3947_v62, %v3949_v63 }
 0x1f7   : > { %2657 = vst [vmem:[%s4046_s12 + $0x18] sm:$0xff] %v2613_v54   ;;  %v1781_v12 = vadd.f32 %v4031_v5, %v1749_v22  ;;  %v1750_v13 = vmax.f32 %v1461_v24, %v1674_v59  ;;  %v4289_v22 = vmax.f32 %v3953_v7, %v3955_v10 }
 0x1f9   : > { %v1782_v42 = vadd.f32 %v4031_v5, %v1750_v13  ;;  %v1806_v27 = vmax.f32 %v1781_v12, 0.0 }
 0x1fa   : > { %v1390_v43 = vpop.f32.mrb[72].mxu0  ;;  %v1679_v0 = vpop.f32.mrb[72].mxu1 }
 0x1fb   : > { %v1807_v28 = vmax.f32 %v1782_v42, 0.0  ;;  %v1462_v3 = vmax.f32 %v4286_v2, %v1390_v43  ;;  %v2894_v4 = vpop.f32.mrb[73].mxu0  ;;  %v2956_v47 = vpop.f32.mrb[73].mxu1 }
 0x1fc   : > { %v1393_v48 = vpop.f32.mrb[74].mxu0  ;;  %v1682_v17 = vpop.f32.mrb[74].mxu1  ;;  %v4291_v47 = vmax.f32 %v3965_v31, %v3967_v35 }
 0x1fd   : > { %v2618_v18 = vpack.c.bf16 %v1807_v28, %v1806_v27  ;;  %v1751_v19 = vmax.f32 %v1462_v3, %v1679_v0  ;;  %v1463_v11 = vmax.f32 %v4287_v49, %v1393_v48  ;;  %v2895_v14 = vpop.f32.mrb[75].mxu0  ;;  %v2957_v32 = vpop.f32.mrb[75].mxu1  ;;  %v4290_v0 = vmax.f32 %v3959_v20, %v3961_v21 }
 0x1ff   : > { %2658 = vst [vmem:[%s4046_s12 + $0x20] sm:$0xff] %v2618_v18   ;;  %v1783_v33 = vadd.f32 %v4031_v5, %v1751_v19  ;;  %v1752_v44 = vmax.f32 %v1463_v11, %v1682_v17 }
 0x201   : > { %v1784_v52 = vadd.f32 %v4031_v5, %v1752_v44  ;;  %v1808_v9 = vmax.f32 %v1783_v33, 0.0  ;;  %v4292_v33 = vmax.f32 %v3971_v45, %v3973_v46 }
 0x202   : > { %v1398_v53 = vpop.f32.mrb[76].mxu0  ;;  %v1687_v8 = vpop.f32.mrb[76].mxu1 }
 0x203   : > { %v1809_v34 = vmax.f32 %v1784_v52, 0.0  ;;  %v1464_v29 = vmax.f32 %v4288_v39, %v1398_v53  ;;  %v2898_v37 = vpop.f32.mrb[77].mxu0  ;;  %v2960_v57 = vpop.f32.mrb[77].mxu1 }
 0x204   : > { %v1401_v58 = vpop.f32.mrb[78].mxu0  ;;  %v1690_v38 = vpop.f32.mrb[78].mxu1 }
 0x205   : > { %v2623_v59 = vpack.c.bf16 %v1809_v34, %v1808_v9  ;;  %v1753_v54 = vmax.f32 %v1464_v29, %v1687_v8  ;;  %v1465_v23 = vmax.f32 %v4289_v22, %v1401_v58  ;;  %v2899_v24 = vpop.f32.mrb[79].mxu0  ;;  %v2961_v36 = vpop.f32.mrb[79].mxu1  ;;  %v4293_v34 = vmax.f32 %v3977_v56, %v3979_v60 }
 0x206   : > { %v4294_v22 = vmax.f32 %v3983_v15, %v3985_v16 }
 0x207   : > { %2659 = vst [vmem:[%s4046_s12 + $0x28] sm:$0xff] %v2623_v59   ;;  %v1785_v55 = vadd.f32 %v4031_v5, %v1753_v54  ;;  %v1754_v12 = vmax.f32 %v1465_v23, %v1690_v38 }
 0x209   : > { %v1786_v62 = vadd.f32 %v4031_v5, %v1754_v12  ;;  %v1810_v42 = vmax.f32 %v1785_v55, 0.0 }
 0x20a   : > { %v1406_v63 = vpop.f32.mrb[80].mxu0  ;;  %v1695_v13 = vpop.f32.mrb[80].mxu1 }
 0x20b   : > { %v1811_v43 = vmax.f32 %v1786_v62, 0.0  ;;  %v1466_v27 = vmax.f32 %v4290_v0, %v1406_v63  ;;  %v2902_v28 = vpop.f32.mrb[81].mxu0  ;;  %v2964_v7 = vpop.f32.mrb[81].mxu1  ;;  %v4295_v62 = vmax.f32 %v3989_v41, %v3991_v51 }
 0x20c   : > { %v1409_v10 = vpop.f32.mrb[82].mxu0  ;;  %v1698_v2 = vpop.f32.mrb[82].mxu1 }
 0x20d   : > { %v2628_v3 = vpack.c.bf16 %v1811_v43, %v1810_v42  ;;  %v1755_v4 = vmax.f32 %v1466_v27, %v1695_v13  ;;  %v1467_v48 = vmax.f32 %v4291_v47, %v1409_v10  ;;  %v2903_v17 = vpop.f32.mrb[83].mxu0  ;;  %v2965_v18 = vpop.f32.mrb[83].mxu1  ;;  %v4296_v10 = vmax.f32 %v3995_v1, %v3997_v6 }
 0x20e   : > { %v4297_v17 = vmax.f32 %v4001_v30, %v4003_v40 }
 0x20f   : > { %2660 = vst [vmem:[%s4046_s12 + $0x30] sm:$0xff] %v2628_v3   ;;  %v1787_v19 = vadd.f32 %v4031_v5, %v1755_v4  ;;  %v1756_v49 = vmax.f32 %v1467_v48, %v1698_v2 }
 0x211   : > { %v1788_v20 = vadd.f32 %v4031_v5, %v1756_v49  ;;  %v1812_v14 = vmax.f32 %v1787_v19, 0.0 }
 0x212   : > { %v1414_v21 = vpop.f32.mrb[84].mxu0  ;;  %v1703_v11 = vpop.f32.mrb[84].mxu1 }
 0x213   : > { %v1813_v32 = vmax.f32 %v1788_v20, 0.0  ;;  %v1468_v44 = vmax.f32 %v4292_v33, %v1414_v21  ;;  %v2906_v52 = vpop.f32.mrb[85].mxu0  ;;  %v2968_v31 = vpop.f32.mrb[85].mxu1  ;;  %v4298_v33 = vmax.f32 %v4007_v50, %v4009_v61 }
 0x214   : > { %v1417_v35 = vpop.f32.mrb[86].mxu0  ;;  %v1706_v53 = vpop.f32.mrb[86].mxu1 }
 0x215   : > { %v2633_v8 = vpack.c.bf16 %v1813_v32, %v1812_v14  ;;  %v1757_v9 = vmax.f32 %v1468_v44, %v1703_v11  ;;  %v1469_v39 = vmax.f32 %v4293_v34, %v1417_v35  ;;  %v2907_v29 = vpop.f32.mrb[87].mxu0  ;;  %v2969_v37 = vpop.f32.mrb[87].mxu1 }
 0x217   : > { %2661 = vst [vmem:[%s4046_s12 + $0x38] sm:$0xff] %v2633_v8   ;;  %v1789_v57 = vadd.f32 %v4031_v5, %v1757_v9  ;;  %v1758_v58 = vmax.f32 %v1469_v39, %v1706_v53  ;;  %v4299_v8 = vmax.f32 %v4013_v25, %v4015_v26 }
 0x219   : > { %v1790_v45 = vadd.f32 %v4031_v5, %v1758_v58  ;;  %v1814_v59 = vmax.f32 %v1789_v57, 0.0 }
 0x21a   : > { %v1422_v46 = vpop.f32.mrb[88].mxu0  ;;  %v1711_v38 = vpop.f32.mrb[88].mxu1 }
 0x21b   : > { %v1815_v54 = vmax.f32 %v1790_v45, 0.0  ;;  %v1470_v23 = vmax.f32 %v4294_v22, %v1422_v46  ;;  %v2910_v24 = vpop.f32.mrb[89].mxu0  ;;  %v2972_v56 = vpop.f32.mrb[89].mxu1  ;;  %v4300_v46 = vld [vmem:[#allocation4_spill] sm:$0xff] }
 0x21c   : > { %v1425_v60 = vpop.f32.mrb[90].mxu0  ;;  %v1714_v36 = vpop.f32.mrb[90].mxu1 }
 0x21d   : > { %v2638_v55 = vpack.c.bf16 %v1815_v54, %v1814_v59  ;;  %v1759_v12 = vmax.f32 %v1470_v23, %v1711_v38  ;;  %v1471_v63 = vmax.f32 %v4295_v62, %v1425_v60  ;;  %v2911_v13 = vpop.f32.mrb[91].mxu0  ;;  %v2973_v42 = vpop.f32.mrb[91].mxu1  ;;  %v4301_v38 = vld [vmem:[#allocation5_spill] sm:$0xff] }
 0x21e   : > { %v4302_v59 = vmax.f32 %v4300_v46, %v4301_v38 }
 0x21f   : > { %2662 = vst [vmem:[%s4046_s12 + $0x40] sm:$0xff] %v2638_v55   ;;  %v1791_v43 = vadd.f32 %v4031_v5, %v1759_v12  ;;  %v1760_v0 = vmax.f32 %v1471_v63, %v1714_v36 }
 0x221   : > { %v1792_v15 = vadd.f32 %v4031_v5, %v1760_v0  ;;  %v1816_v28 = vmax.f32 %v1791_v43, 0.0 }
 0x222   : > { %v1430_v16 = vpop.f32.mrb[92].mxu0  ;;  %v1719_v27 = vpop.f32.mrb[92].mxu1 }
 0x223   : > { %v1817_v7 = vmax.f32 %v1792_v15, 0.0  ;;  %v1472_v2 = vmax.f32 %v4296_v10, %v1430_v16  ;;  %v2914_v3 = vpop.f32.mrb[93].mxu0  ;;  %v2976_v41 = vpop.f32.mrb[93].mxu1 }
 0x224   : > { %v1433_v51 = vpop.f32.mrb[94].mxu0  ;;  %v1722_v4 = vpop.f32.mrb[94].mxu1 }
 0x225   : > { %v2643_v47 = vpack.c.bf16 %v1817_v7, %v1816_v28  ;;  %v1761_v48 = vmax.f32 %v1472_v2, %v1719_v27  ;;  %v1473_v18 = vmax.f32 %v4297_v17, %v1433_v51  ;;  %v2915_v19 = vpop.f32.mrb[95].mxu0  ;;  %v2977_v49 = vpop.f32.mrb[95].mxu1 }
 0x227   : > { %2663 = vst [vmem:[%s4046_s12 + $0x48] sm:$0xff] %v2643_v47   ;;  %v1793_v20 = vadd.f32 %v4031_v5, %v1761_v48  ;;  %v1762_v21 = vmax.f32 %v1473_v18, %v1722_v4 }
 0x229   : > { %v1794_v1 = vadd.f32 %v4031_v5, %v1762_v21  ;;  %v1818_v14 = vmax.f32 %v1793_v20, 0.0 }
 0x22a   : > { %v1438_v6 = vpop.f32.mrb[96].mxu0  ;;  %v1727_v11 = vpop.f32.mrb[96].mxu1 }
 0x22b   : > { %v1819_v32 = vmax.f32 %v1794_v1, 0.0  ;;  %v1474_v44 = vmax.f32 %v4298_v33, %v1438_v6  ;;  %v2918_v52 = vpop.f32.mrb[97].mxu0  ;;  %v2980_v30 = vpop.f32.mrb[97].mxu1 }
 0x22c   : > { %v1441_v40 = vpop.f32.mrb[98].mxu0  ;;  %v1730_v31 = vpop.f32.mrb[98].mxu1 }
 0x22d   : > { %v2648_v35 = vpack.c.bf16 %v1819_v32, %v1818_v14  ;;  %v1763_v53 = vmax.f32 %v1474_v44, %v1727_v11  ;;  %v1475_v9 = vmax.f32 %v4299_v8, %v1441_v40  ;;  %v2919_v34 = vpop.f32.mrb[99].mxu0  ;;  %v2981_v39 = vpop.f32.mrb[99].mxu1 }
 0x22f   : > { %2664 = vst [vmem:[%s4046_s12 + $0x50] sm:$0xff] %v2648_v35   ;;  %v1795_v29 = vadd.f32 %v4031_v5, %v1763_v53  ;;  %v1764_v37 = vmax.f32 %v1475_v9, %v1730_v31 }
 0x231   : > { %v1796_v50 = vadd.f32 %v4031_v5, %v1764_v37  ;;  %v1820_v58 = vmax.f32 %v1795_v29, 0.0 }
 0x232   : > { %v1446_v61 = vpop.f32.mrb[100].mxu0  ;;  %v1735_v57 = vpop.f32.mrb[100].mxu1 }
 0x233   : > { %v1821_v45 = vmax.f32 %v1796_v50, 0.0  ;;  %v1476_v54 = vmax.f32 %v4302_v59, %v1446_v61  ;;  %v2922_v25 = vpop.f32.mrb[101].mxu0  ;;  %v2984_v26 = vpop.f32.mrb[101].mxu1 }
 0x234   : > { %v1449_v22 = vpop.f32.mrb[102].mxu0  ;;  %v1738_v23 = vpop.f32.mrb[102].mxu1 }
 0x235   : > { %v2653_v24 = vpack.c.bf16 %v1821_v45, %v1820_v58  ;;  %v1765_v56 = vmax.f32 %v1476_v54, %v1735_v57  ;;  %v2923_v60 = vpop.f32.mrb[103].mxu0  ;;  %v2985_v36 = vpop.f32.mrb[103].mxu1 }
 0x237   : > { %2665 = vst [vmem:[%s4046_s12 + $0x58] sm:$0xff] %v2653_v24   ;;  %v1797_v55 = vadd.f32 %v4031_v5, %v1765_v56  ;;  %1955 = sbr.rel (!%p3412_p5) target bundleno = 652 (0x28c), region = 98 }
 0x239   : > { %v1822_v12 = vmax.f32 %v1797_v55, 0.0 }
 0x23b   : > { %v2593_v62 = vpack.c.bf16 %v1822_v12, %v1822_v12 }
 0x23d   : > { %1948 = vst [vmem:[%s4046_s12 + $0x60] sm:$0xf] %v2593_v62 }
 0x23e   : > { %s4316_s26 = smov (!%p1958_p4, %s1957_s26), 25 }
 0x23f   : > { %s2554_s29 = sshll.u32 %s4316_s26, 6 }
 0x240   : > { %p2557_p6 = scmp.eq.s32.totalorder %s2554_s29, 0 }
 0x241   : > { %3202 = sdivrem.u32 (!%p2557_p6), %s4316_s26, 25 }
 0x242   : > { %1966 = sbr.rel (%p2557_p6) target bundleno = 652 (0x28c), region = 102 }
 0x24a   : > { %s4160_s20 = spop.drf %3202 }
 0x24b   : > { %p2558_p5 = scmp.le.s32.totalorder %s4160_s20, 0 }
 0x24c   : > { %s4303_s15 = smov (!%p2558_p5), %s4154_s28  ;;  %s4304_s30 = smov (!%p2558_p5), %s4046_s12 }
 0x24d   : > { %2283 = sbr.rel (%p2558_p5) target bundleno = 623 (0x26f), region = 218  ;;  %s4169_s4 = smov (!%p2558_p5), 0  }
 0x24e   : > { %s4171_s14 = smov (!%p2558_p5), 0  }
 0x254 LB: >> { %v1983_v5 = vld [vmem:[%s3332_s30] sm:$0xf]  ;;  %v1985_v63 = vld [vmem:[%s3332_s30 + $0x4] sm:$0xf]  ;;  %v1987_v13 = vld [vmem:[%s3332_s30 + $0x8] sm:$0xf]  ;;  %s3340_s14 = sphi %s4171_s14, %s1977_s14   ;;  %s3336_s4 = sphi %s4169_s4, %s4305_s4   ;;  %s3332_s30 = sphi %s4304_s30, %s2038_s30   ;;  %s3328_s15 = sphi %s4303_s15, %s2039_s15  }
 0x255   : >> { %1984 = vst [vmem:[%s3328_s15] sm:$0xf] %v1983_v5  ;;  %1986 = vst [vmem:[%s3328_s15 + $0x4] sm:$0xf] %v1985_v63  ;;  %v1989_v42 = vld [vmem:[%s3332_s30 + $0xc] sm:$0xf]  ;;  %s2033_s5 = sadd.s32 1, %s3336_s4 }
 0x256   : >> { %1988 = vst [vmem:[%s3328_s15 + $0x8] sm:$0xf] %v1987_v13  ;;  %v1991_v43 = vld [vmem:[%s3332_s30 + $0x10] sm:$0xf]  ;;  %v1993_v0 = vld [vmem:[%s3332_s30 + $0x14] sm:$0xf]  ;;  %p2034_p7 = scmp.ge.s32.totalorder %s2033_s5, %s4160_s20 }
 0x257   : >> { %1990 = vst [vmem:[%s3328_s15 + $0xc] sm:$0xf] %v1989_v42  ;;  %1992 = vst [vmem:[%s3328_s15 + $0x10] sm:$0xf] %v1991_v43  ;;  %v1995_v15 = vld [vmem:[%s3332_s30 + $0x18] sm:$0xf] }
 0x258   : >> { %1994 = vst [vmem:[%s3328_s15 + $0x14] sm:$0xf] %v1993_v0  ;;  %v1997_v16 = vld [vmem:[%s3332_s30 + $0x1c] sm:$0xf]  ;;  %v1999_v27 = vld [vmem:[%s3332_s30 + $0x20] sm:$0xf] }
 0x259   : >> { %1996 = vst [vmem:[%s3328_s15 + $0x18] sm:$0xf] %v1995_v15  ;;  %1998 = vst [vmem:[%s3328_s15 + $0x1c] sm:$0xf] %v1997_v16  ;;  %v2001_v28 = vld [vmem:[%s3332_s30 + $0x24] sm:$0xf] }
 0x25a   : >> { %2000 = vst [vmem:[%s3328_s15 + $0x20] sm:$0xf] %v1999_v27  ;;  %v2003_v7 = vld [vmem:[%s3332_s30 + $0x28] sm:$0xf]  ;;  %v2005_v10 = vld [vmem:[%s3332_s30 + $0x2c] sm:$0xf] }
 0x25b   : >> { %2002 = vst [vmem:[%s3328_s15 + $0x24] sm:$0xf] %v2001_v28  ;;  %2004 = vst [vmem:[%s3328_s15 + $0x28] sm:$0xf] %v2003_v7  ;;  %v2007_v2 = vld [vmem:[%s3332_s30 + $0x30] sm:$0xf] }
 0x25c   : >> { %2006 = vst [vmem:[%s3328_s15 + $0x2c] sm:$0xf] %v2005_v10  ;;  %v2009_v3 = vld [vmem:[%s3332_s30 + $0x34] sm:$0xf]  ;;  %v2011_v41 = vld [vmem:[%s3332_s30 + $0x38] sm:$0xf] }
 0x25d   : >> { %2008 = vst [vmem:[%s3328_s15 + $0x30] sm:$0xf] %v2007_v2  ;;  %2010 = vst [vmem:[%s3328_s15 + $0x34] sm:$0xf] %v2009_v3  ;;  %v2013_v51 = vld [vmem:[%s3332_s30 + $0x3c] sm:$0xf] }
 0x25e   : >> { %2012 = vst [vmem:[%s3328_s15 + $0x38] sm:$0xf] %v2011_v41  ;;  %v2015_v4 = vld [vmem:[%s3332_s30 + $0x40] sm:$0xf]  ;;  %v2017_v47 = vld [vmem:[%s3332_s30 + $0x44] sm:$0xf] }
 0x25f   : >> { %2014 = vst [vmem:[%s3328_s15 + $0x3c] sm:$0xf] %v2013_v51  ;;  %2016 = vst [vmem:[%s3328_s15 + $0x40] sm:$0xf] %v2015_v4  ;;  %v2019_v48 = vld [vmem:[%s3332_s30 + $0x48] sm:$0xf] }
 0x260   : >> { %2018 = vst [vmem:[%s3328_s15 + $0x44] sm:$0xf] %v2017_v47  ;;  %v2021_v17 = vld [vmem:[%s3332_s30 + $0x4c] sm:$0xf]  ;;  %v2023_v18 = vld [vmem:[%s3332_s30 + $0x50] sm:$0xf] }
 0x261   : >> { %2020 = vst [vmem:[%s3328_s15 + $0x48] sm:$0xf] %v2019_v48  ;;  %2022 = vst [vmem:[%s3328_s15 + $0x4c] sm:$0xf] %v2021_v17  ;;  %v2025_v19 = vld [vmem:[%s3332_s30 + $0x54] sm:$0xf] }
 0x262   : >> { %2024 = vst [vmem:[%s3328_s15 + $0x50] sm:$0xf] %v2023_v18  ;;  %v2027_v49 = vld [vmem:[%s3332_s30 + $0x58] sm:$0xf]  ;;  %v2029_v20 = vld [vmem:[%s3332_s30 + $0x5c] sm:$0xf] }
 0x263   : >> { %2026 = vst [vmem:[%s3328_s15 + $0x54] sm:$0xf] %v2025_v19  ;;  %2028 = vst [vmem:[%s3328_s15 + $0x58] sm:$0xf] %v2027_v49  ;;  %v2031_v21 = vld [vmem:[%s3332_s30 + $0x60] sm:$0xf] }
 0x264   : >> { %2030 = vst [vmem:[%s3328_s15 + $0x5c] sm:$0xf] %v2029_v20  ;;  %2032 = vst [vmem:[%s3328_s15 + $0x60] sm:$0xf] %v2031_v21  ;;  %s4318_s5 = smov (%p2034_p7, %s2033_s5), 0  ;;  %s1977_s14 = sadd.s32 1, %s3340_s14  }
 0x265   : >> { %s2036_s6 = smul.u32 100, %s4318_s5  ;;  %p1976_p8 = scmp.ge.s32.totalorder %s1977_s14, %s4160_s20 }
 0x266   : >> { %s4305_s4 = smov %s4318_s5 }
 0x267   : >> { %s2038_s30 = scalar_lea.vmem %s4046_s12, %s2036_s6 [#allocation3]   ;;  %s2039_s15 = scalar_lea.vmem %s4154_s28, %s2036_s6  }
 0x268   : > { %1979 = sbr.rel (!%p1976_p8) target bundleno = 596 (0x254), region = 224 }
 0x26f PF: > { %3204 = sdivrem.u32 %s4316_s26, 25 }
 0x270   : > { %s2559_s7 = smul.u32 100, %s4160_s20 }
 0x272   : > { %s2044_s8 = scalar_lea.vmem %s4046_s12, %s2559_s7 [#allocation3]   ;;  %s2046_s9 = scalar_lea.vmem %s4154_s28, %s2559_s7  }
 0x278   : > { %s3205_s10 = spop.drf %3204 }
 0x279   : > { %p2561_p9 = scmp.le.s32.totalorder %s3205_s10, 0 }
 0x27a   : > { %s3342_s11 = smov (!%p2561_p9), %s2046_s9   ;;  %s3346_s17 = smov (!%p2561_p9), %s2044_s8  }
 0x27b   : > { %2297 = sbr.rel (%p2561_p9) target bundleno = 652 (0x28c), region = 229  ;;  %s3350_s18 = smov (!%p2561_p9), 0  }
 0x27c   : > { %s3354_s21 = smov (!%p2561_p9), 0  }
 0x282 LB: >> { %v2056_v1 = vld [vmem:[%s3348_s17] sm:$0xf]  ;;  %s2058_s22 = sadd.s32 1, %s3352_s18  ;;  %s2050_s21 = sadd.s32 1, %s3356_s21   ;;  %s3356_s21 = sphi %s3354_s21, %s2050_s21   ;;  %s3352_s18 = sphi %s3350_s18, %s3351_s18   ;;  %s3348_s17 = sphi %s3346_s17, %s2063_s17   ;;  %s3344_s11 = sphi %s3342_s11, %s2064_s11  }
 0x283   : >> { %2057 = vst [vmem:[%s3344_s11] sm:$0xf] %v2056_v1  ;;  %p2059_p10 = scmp.ge.s32.totalorder %s2058_s22, %s3205_s10  ;;  %p2049_p11 = scmp.ge.s32.totalorder %s2050_s21, %s3205_s10 }
 0x285   : >> { %s4320_s22 = smov (%p2059_p10, %s2058_s22), 0  ;;  %2052 = sbr.rel (!%p2049_p11) target bundleno = 642 (0x282), region = 235 }
 0x286   : >> { %s2562_s12 = sshll.u32 %s4320_s22, 2  ;;  %s3351_s18 = smov %s4320_s22  }
 0x287   : >> { %s2063_s17 = scalar_lea.vmem %s2044_s8, %s2562_s12 [#allocation3]   ;;  %s2064_s11 = scalar_lea.vmem %s2046_s9, %s2562_s12  }
 0x28c PF: > { %p10_p12 = scmp.ge.s32.totalorder %s3400_s16, 4   ;;  %s4306_s12 = smov %s3288_s13 }
 0x28d   : > { %s4307_s13 = smov %s3410_s19  ;;  %s4308_s14 = smov %s3400_s16 }
 0x28e   :  { %12 = sbr.rel (!%p10_p12) target bundleno = 2 (0x2), region = 246 }

// kernel: net_forward.4
= control target key start
LH: loop header
LB: loop body
LE: loop exit
PB: predicated region body
PF: predicated region fallthrough
CT: control target
= control target key end

     0   :  { %s1553_s12 = smov 0   ;;  %s1555_s13 = smov 0   ;;  %s1912_s0 = inlined_call_operand.vmem [shape: bf16[4,50,150], index: 0, kind: input, shape index: {}]   ;;  %s1913_s1 = inlined_call_operand.vmem [shape: bf16[150,128], index: 1, kind: input, shape index: {}]   ;;  %s1914_s2 = inlined_call_operand.vmem [shape: f32[1,128], index: 2, kind: input, shape index: {}]   ;;  %s1915_s3 = inlined_call_operand.vmem [shape: bf16[50,128], index: 3, kind: output, shape index: {}]  }
   0x1   :  { %s1557_s14 = smov 0  }
   0x2 LB: > { %s1569_s15 = sadd.s32 4294967295, %s1466_s14   ;;  %s1572_s16 = sadd.s32 1, %s1466_s14   ;;  %s1466_s14 = sphi %s1557_s14, %s1927_s14   ;;  %s1462_s13 = sphi %s1555_s13, %s1926_s13   ;;  %s1458_s12 = sphi %s1553_s12, %s1925_s12  }
   0x3   : > { %s17_s17 = ssub.s32 %s1466_s14, %s1572_s16  ;;  %s20_s18 = sadd.s32 1, %s1462_s13 }
   0x4   : > { %p18_p0 = scmp.eq.s32.totalorder %s17_s17, 0  ;;  %p27_p1 = scmp.ne.s32.totalorder %s1462_s13, %s1458_s12 }
   0x5   : > { %p28_p2 = scmp.eq.s32.totalorder %s1466_s14, 0  ;;  %p99_p3 = scmp.eq.s32.totalorder %s1569_s15, 1 }
   0x6   : > { %s1582_s19 = scalar_select %p18_p0, %s1462_s13, %s20_s18  }
   0x7   : > { %p29_p4 = por %p28_p2, %p27_p1  ;;  %p1584_p5 = por %p99_p3, %p27_p1 }
   0x8   : > { %p1081_p6 = scmp.ge.s32.totalorder %s1466_s14, 2 }
   0xa   : > { %127 = sbr.rel (%p1081_p6) target bundleno = 73 (0x49), region = 24 }
  0x11   : > { %130 = sbr.rel (!%p29_p4) target bundleno = 73 (0x49), region = 28  ;;  %s132_s21 = sand.u32 (%p29_p4), 1, %s1462_s13  }
  0x12   : > { %s1083_s22 = sshll.u32 (%p29_p4), %s1466_s14, 2  ;;  %s1082_s23 = sshll.u32 (%p29_p4), %s132_s21, 7 }
  0x13   : > { %s136_s24 = ssub.s32 (%p29_p4), 7, %s1083_s22  ;;  %s1172_s25 = sshll.u32 (%p29_p4), %s1466_s14, 5 }
  0x14   : > { %p137_p7 = scmp.lt.s32.totalorder (%p29_p4), %s136_s24, 4  ;;  %s1597_s28 = scalar_lea.vmem (%p29_p4), %s1912_s0, %s1172_s25  }
  0x15   : > { %s1600_s30 = scalar_lea.vmem (%p29_p4), [#allocation2], %s1082_s23  }
  0x18   : > { %s1929_s24 = smov (!%p137_p7, %s136_s24), 4 }
  0x19   : > { %s1170_s29 = sshll.u32 %s1929_s24, 9 }
  0x1a   : > { %p1089_p8 = scmp.eq.s32.totalorder %s1170_s29, 0 }
  0x1b   : > { %s1603_s4 = sshrl.u32 (!%p1089_p8), %s1929_s24, 2 }
  0x1c   : > { %147 = sbr.rel (%p1089_p8) target bundleno = 73 (0x49), region = 32  ;;  %p1090_p9 = scmp.le.s32.totalorder (!%p1089_p8), %s1603_s4, 0 }
  0x23   : > { %1007 = sbr.rel (%p1090_p9) target bundleno = 52 (0x34), region = 180  ;;  %s1917_s5 = smov (!%p1090_p9), %s1600_s30 }
  0x24   : > { %s1918_s6 = smov (!%p1090_p9), %s1597_s28  ;;  %s1612_s7 = smov (!%p1090_p9), 0  }
  0x25   : > { %s1614_s8 = smov (!%p1090_p9), 0  }
  0x2a LB: >> { %v245_v0 = vld [vmem:[%s1474_s6] sm:$0xff]  ;;  %v247_v1 = vld [vmem:[%s1474_s6 + $0x8] sm:$0xff]  ;;  %v249_v2 = vld [vmem:[%s1474_s6 + $0x10] sm:$0xff]  ;;  %s277_s9 = sadd.s32 1, %s1478_s7  ;;  %s239_s8 = sadd.s32 1, %s1482_s8   ;;  %s1482_s8 = sphi %s1614_s8, %s239_s8   ;;  %s1478_s7 = sphi %s1612_s7, %s1919_s7   ;;  %s1474_s6 = sphi %s1918_s6, %s282_s6   ;;  %s1470_s5 = sphi %s1917_s5, %s283_s5  }
  0x2b   : >> { %246 = vst [vmem:[%s1470_s5] sm:$0xff] %v245_v0  ;;  %248 = vst [vmem:[%s1470_s5 + $0x8] sm:$0xff] %v247_v1  ;;  %v251_v3 = vld [vmem:[%s1474_s6 + $0x18] sm:$0xff]  ;;  %v255_v5 = vld [vmem:[%s1474_s6 + $0x40] sm:$0xff]  ;;  %p278_p10 = scmp.ge.s32.totalorder %s277_s9, %s1603_s4  ;;  %p238_p11 = scmp.ge.s32.totalorder %s239_s8, %s1603_s4 }
  0x2c   : >> { %250 = vst [vmem:[%s1470_s5 + $0x10] sm:$0xff] %v249_v2  ;;  %v253_v4 = vld [vmem:[%s1474_s6 + $0x38] sm:$0xff]  ;;  %252 = vst [vmem:[%s1470_s5 + $0x18] sm:$0xff] %v251_v3  ;;  %v257_v6 = vld [vmem:[%s1474_s6 + $0x48] sm:$0xff] }
  0x2d   : >> { %254 = vst [vmem:[%s1470_s5 + $0x20] sm:$0xff] %v253_v4  ;;  %256 = vst [vmem:[%s1470_s5 + $0x28] sm:$0xff] %v255_v5  ;;  %v259_v7 = vld [vmem:[%s1474_s6 + $0x50] sm:$0xff]  ;;  %v263_v9 = vld [vmem:[%s1474_s6 + $0x78] sm:$0xff]  ;;  %s1931_s9 = smov (%p278_p10, %s277_s9), 0  ;;  %241 = sbr.rel (!%p238_p11) target bundleno = 42 (0x2a), region = 186 }
  0x2e   : >> { %v261_v8 = vld [vmem:[%s1474_s6 + $0x70] sm:$0xff]  ;;  %258 = vst [vmem:[%s1470_s5 + $0x30] sm:$0xff] %v257_v6  ;;  %260 = vst [vmem:[%s1470_s5 + $0x38] sm:$0xff] %v259_v7  ;;  %v265_v10 = vld [vmem:[%s1474_s6 + $0x80] sm:$0xff]  ;;  %s1091_s10 = sshll.u32 %s1931_s9, 5  ;;  %s1919_s7 = smov %s1931_s9 }
  0x2f   : >> { %262 = vst [vmem:[%s1470_s5 + $0x40] sm:$0xff] %v261_v8  ;;  %v267_v11 = vld [vmem:[%s1474_s6 + $0x88] sm:$0xff]  ;;  %264 = vst [vmem:[%s1470_s5 + $0x48] sm:$0xff] %v263_v9  ;;  %v271_v13 = vld [vmem:[%s1474_s6 + $0xb0] sm:$0xff] }
  0x30   : >> { %266 = vst [vmem:[%s1470_s5 + $0x50] sm:$0xff] %v265_v10  ;;  %268 = vst [vmem:[%s1470_s5 + $0x58] sm:$0xff] %v267_v11  ;;  %v269_v12 = vld [vmem:[%s1474_s6 + $0xa8] sm:$0xff]  ;;  %v273_v14 = vld [vmem:[%s1474_s6 + $0xb8] sm:$0xff] }
  0x31   : >> { %270 = vst [vmem:[%s1470_s5 + $0x60] sm:$0xff] %v269_v12  ;;  %272 = vst [vmem:[%s1470_s5 + $0x68] sm:$0xff] %v271_v13  ;;  %v275_v15 = vld [vmem:[%s1474_s6 + $0xc0] sm:$0xff]  ;;  %s282_s6 = scalar_lea.vmem %s1597_s28, %s1091_s10  }
  0x32   : >> { %274 = vst [vmem:[%s1470_s5 + $0x70] sm:$0xff] %v273_v14  ;;  %276 = vst [vmem:[%s1470_s5 + $0x78] sm:$0xff] %v275_v15  ;;  %s283_s5 = scalar_lea.vmem %s1600_s30, %s1091_s10 [#allocation2]  }
  0x34 PF: > { %s1672_s11 = sand.u32 3, %s1929_s24   ;;  %s1173_s17 = sshll.u32 %s1603_s4, 5 }
  0x35   : > { %s1676_s18 = scalar_lea.vmem %s1597_s28, %s1173_s17   ;;  %s1679_s21 = scalar_lea.vmem %s1600_s30, %s1173_s17 [#allocation2]  }
  0x36   : > { %p1096_p12 = scmp.le.s32.totalorder %s1672_s11, 0 }
  0x37   : > { %s1920_s22 = smov (!%p1096_p12), %s1679_s21  ;;  %s1921_s23 = smov (!%p1096_p12), %s1676_s18 }
  0x38   : > { %1021 = sbr.rel (%p1096_p12) target bundleno = 73 (0x49), region = 191  ;;  %s1492_s25 = smov (!%p1096_p12), 0  }
  0x39   : > { %s1496_s26 = smov (!%p1096_p12), 0  }
  0x3f LB: >> { %v300_v16 = vld [vmem:[%s1490_s23] sm:$0xff]  ;;  %v302_v17 = vld [vmem:[%s1490_s23 + $0x38] sm:$0xff]  ;;  %v304_v18 = vld [vmem:[%s1490_s23 + $0x70] sm:$0xff]  ;;  %s308_s24 = sadd.s32 1, %s1494_s25  ;;  %s294_s26 = sadd.s32 1, %s1498_s26   ;;  %s1498_s26 = sphi %s1496_s26, %s294_s26   ;;  %s1494_s25 = sphi %s1492_s25, %s1493_s25   ;;  %s1490_s23 = sphi %s1921_s23, %s313_s23   ;;  %s1486_s22 = sphi %s1920_s22, %s314_s22  }
  0x40   : >> { %301 = vst [vmem:[%s1486_s22] sm:$0xff] %v300_v16  ;;  %303 = vst [vmem:[%s1486_s22 + $0x20] sm:$0xff] %v302_v17  ;;  %v306_v19 = vld [vmem:[%s1490_s23 + $0xa8] sm:$0xff]  ;;  %p309_p13 = scmp.ge.s32.totalorder %s308_s24, %s1672_s11  ;;  %p293_p0 = scmp.ge.s32.totalorder %s294_s26, %s1672_s11 }
  0x41   : >> { %305 = vst [vmem:[%s1486_s22 + $0x40] sm:$0xff] %v304_v18  ;;  %307 = vst [vmem:[%s1486_s22 + $0x60] sm:$0xff] %v306_v19 }
  0x42   : >> { %s1933_s24 = smov (%p309_p13, %s308_s24), 0  ;;  %296 = sbr.rel (!%p293_p0) target bundleno = 63 (0x3f), region = 197 }
  0x43   : >> { %s1097_s27 = sshll.u32 %s1933_s24, 3  ;;  %s1493_s25 = smov %s1933_s24  }
  0x44   : >> { %s313_s23 = scalar_lea.vmem %s1676_s18, %s1097_s27   ;;  %s314_s22 = scalar_lea.vmem %s1679_s21, %s1097_s27 [#allocation2]  }
  0x49 PF: > { %p1099_p1 = scmp.ge.s32.totalorder %s1466_s14, 1  ;;  %p319_p2 = scmp.lt.s32.totalorder %s1466_s14, 3 }
  0x4b   : > { %p320_p3 = pnand %p1099_p1, %p319_p2 }
  0x4c   : > { %v1703_v20 = vld [vmem:[%s1913_s1] sm:$0xff] (!%p320_p3)   ;;  %v1532_v21 = vmov (!%p320_p3), 0   ;;  %v1712_v22 = vld [vmem:[%s1913_s1 + $0x8] sm:$0xff] (!%p320_p3)   ;;  %s326_s4 = sand.u32 (!%p320_p3), 1, %s1458_s12   ;;  %v1724_v23 = vld [vmem:[%s1913_s1 + $0x10] sm:$0xff] (!%p320_p3)   ;;  %vm458_vm0 = vcmask (!%p320_p3), 179200  }
  0x4d   : > { %323 = sbr.rel (%p320_p3) target bundleno = 443 (0x1bb), region = 80  ;;  %469 = vmatprep.subr.bf16.mxu0 (!%p320_p3), %v1532_v21  ;;  %547 = vmatprep.subr.bf16.mxu1 (!%p320_p3), %v1532_v21  ;;  %s1100_s5 = sshll.u32 (!%p320_p3), %s326_s4, 7  ;;  %v1735_v24 = vld [vmem:[%s1913_s1 + $0x18] sm:$0xff] (!%p320_p3)   ;;  %v1747_v27 = vld [vmem:[%s1913_s1 + $0x20] sm:$0xff] (!%p320_p3)   ;;  %v1757_v28 = vld [vmem:[%s1913_s1 + $0x28] sm:$0xff] (!%p320_p3)   ;;  %vm465_vm1 = vcmask (!%p320_p3), 1042432  }
  0x4e   : > { %470 = vmatpush1.bf16.msra.mxu0 (!%p320_p3), %v1703_v20  ;;  %548 = vmatpush1.bf16.msra.mxu1 (!%p320_p3), %v1703_v20  ;;  %s1728_s8 = scalar_lea.vmem (!%p320_p3), [#allocation2], %s1100_s5  ;;  %v1766_v29 = vld [vmem:[%s1913_s1 + $0x30] sm:$0xff] (!%p320_p3)   ;;  %v1775_v30 = vld [vmem:[%s1913_s1 + $0x38] sm:$0xff] (!%p320_p3)   ;;  %v1354_v31 = vld [vmem:[%s1913_s1 + $0x40] sm:$0xff] (!%p320_p3)   ;;  %s1101_s5 = sshll.u32 (!%p320_p3), %s326_s4, 4 }
  0x4f   : > { %471 = vmatprep.subr.bf16.mxu0 (!%p320_p3), %v1532_v21  ;;  %549 = vmatprep.subr.bf16.mxu1 (!%p320_p3), %v1532_v21  ;;  %v1358_v25 = vld [vmem:[%s1728_s8 + $0x4] ss:$8 sps:$4 sm:$0xff] (!%p320_p3)   ;;  %v1355_v32 = vld [vmem:[%s1913_s1 + $0x48] ss:$0 sps:$4 sm:$0x77] (!%p320_p3)   ;;  %s1852_s6 = scalar_lea.vmem (!%p320_p3), [#allocation3], %s1101_s5  }
  0x50   : > { %1116 = vmatprep.mubr.msk.bf16.mxu0 (!%p320_p3), %vm458_vm0, %v1358_v25  ;;  %v1361_v26 = vld [vmem:[%s1728_s8 + $0x24] ss:$8 sps:$4 sm:$0xff] (!%p320_p3)   ;;  %v467_v33 = vsel (!%p320_p3), %vm465_vm1, %v1355_v32, 0  ;;  %v1356_v34 = vld [vmem:[%s1728_s8] ss:$8 sps:$4 sm:$0xff] (!%p320_p3)  }
  0x51   : > { %1126 = vmatprep.mubr.msk.bf16.mxu1 (!%p320_p3), %vm458_vm0, %v1361_v26  ;;  %v1359_v35 = vld [vmem:[%s1728_s8 + $0x20] ss:$8 sps:$4 sm:$0xff] (!%p320_p3)   ;;  %v1362_v36 = vld [vmem:[%s1728_s8 + $0x14] ss:$8 sps:$4 sm:$0xff] (!%p320_p3)   ;;  %v1364_v38 = vld [vmem:[%s1728_s8 + $0x10] ss:$8 sps:$4 sm:$0xff] (!%p320_p3)  }
  0x52   : > { %472 = vmatpush1.bf16.msra.mxu0 (!%p320_p3), %v1712_v22  ;;  %550 = vmatpush1.bf16.msra.mxu1 (!%p320_p3), %v1712_v22  ;;  %v1365_v37 = vld [vmem:[%s1728_s8 + $0x34] ss:$8 sps:$4 sm:$0xff] (!%p320_p3)   ;;  %v1367_v39 = vld [vmem:[%s1728_s8 + $0x30] ss:$8 sps:$4 sm:$0xff] (!%p320_p3)   ;;  %v1370_v40 = vld [vmem:[%s1728_s8 + $0x44] ss:$8 sps:$4 sm:$0xff] (!%p320_p3)  }
  0x53   : > { %473 = vmatprep.subr.bf16.mxu0 (!%p320_p3), %v1532_v21  ;;  %551 = vmatprep.subr.bf16.mxu1 (!%p320_p3), %v1532_v21  ;;  %v1373_v41 = vld [vmem:[%s1728_s8 + $0x64] ss:$8 sps:$4 sm:$0xff] (!%p320_p3)   ;;  %v1368_v42 = vld [vmem:[%s1728_s8 + $0x40] ss:$8 sps:$4 sm:$0xff] (!%p320_p3)   ;;  %v1374_v44 = vld [vmem:[%s1728_s8 + $0x54] ss:$8 sps:$4 sm:$0xff] (!%p320_p3)  }
  0x54   : > { %v1371_v43 = vld [vmem:[%s1728_s8 + $0x60] ss:$8 sps:$4 sm:$0xff]   ;;  %v1376_v45 = vld [vmem:[%s1728_s8 + $0x74] ss:$8 sps:$4 sm:$0xff]   ;;  %v1378_v46 = vld [vmem:[%s1728_s8 + $0x50] ss:$8 sps:$4 sm:$0xff]  }
  0x55   : > { %v1379_v47 = vld [vmem:[%s1728_s8 + $0x70] ss:$8 sps:$4 sm:$0xff]   ;;  %v1148_v9 = vld [vmem:[%s1914_s2] ss:$0 sm:$0xff]  ;;  %s1154_s12 = sshll.u32 (%p1584_p5), %s1569_s15, 2  ;;  %s1179_s4 = sshll.u32 (%p1584_p5), %s1569_s15, 4 }
  0x56   : > { %474 = vmatpush1.bf16.msra.mxu0 %v1724_v23  ;;  %552 = vmatpush1.bf16.msra.mxu1 %v1724_v23  ;;  %s807_s7 = ssub.s32 (%p1584_p5), 7, %s1154_s12  ;;  %s1863_s10 = scalar_lea.vmem (%p1584_p5), %s1915_s3, %s1179_s4  }
  0x57   : > { %475 = vmatprep.subr.bf16.mxu0 %v1532_v21  ;;  %553 = vmatprep.subr.bf16.mxu1 %v1532_v21  ;;  %p808_p4 = scmp.lt.s32.totalorder (%p1584_p5), %s807_s7, 4 }
  0x5a   : > { %476 = vmatpush1.bf16.msra.mxu0 %v1735_v24  ;;  %554 = vmatpush1.bf16.msra.mxu1 %v1735_v24 }
  0x5b   : > { %477 = vmatprep.subr.bf16.mxu0 %v1532_v21  ;;  %555 = vmatprep.subr.bf16.mxu1 %v1532_v21 }
  0x5e   : > { %478 = vmatpush1.bf16.msra.mxu0 %v1747_v27  ;;  %556 = vmatpush1.bf16.msra.mxu1 %v1747_v27 }
  0x5f   : > { %479 = vmatprep.subr.bf16.mxu0 %v1532_v21  ;;  %557 = vmatprep.subr.bf16.mxu1 %v1532_v21 }
  0x62   : > { %480 = vmatpush1.bf16.msra.mxu0 %v1757_v28  ;;  %558 = vmatpush1.bf16.msra.mxu1 %v1757_v28 }
  0x63   : > { %481 = vmatprep.subr.bf16.mxu0 %v1532_v21  ;;  %559 = vmatprep.subr.bf16.mxu1 %v1532_v21 }
  0x66   : > { %482 = vmatpush1.bf16.msra.mxu0 %v1766_v29  ;;  %560 = vmatpush1.bf16.msra.mxu1 %v1766_v29 }
  0x67   : > { %483 = vmatprep.subr.bf16.mxu0 %v1532_v21  ;;  %561 = vmatprep.subr.bf16.mxu1 %v1532_v21 }
  0x6a   : > { %484 = vmatpush1.bf16.msra.mxu0 %v1775_v30  ;;  %562 = vmatpush1.bf16.msra.mxu1 %v1775_v30 }
  0x6b   : > { %485 = vmatprep.subr.bf16.mxu0 %v1532_v21  ;;  %563 = vmatprep.subr.bf16.mxu1 %v1532_v21 }
  0x6e   : > { %486 = vmatpush1.bf16.msra.mxu0 %v1354_v31  ;;  %564 = vmatpush1.bf16.msra.mxu1 %v1354_v31 }
  0x6f   : > { %487 = vmatprep.subr.bf16.mxu0 %v1532_v21  ;;  %565 = vmatprep.subr.bf16.mxu1 %v1532_v21 }
  0x72   : > { %488 = vmatpush1.bf16.msra.mxu0 %v467_v33  ;;  %566 = vmatpush1.bf16.msra.mxu1 %v467_v33 }
  0x73   : > { %629 = vmatprep.subr.bf16.mxu0 %v1532_v21  ;;  %711 = vmatprep.subr.bf16.mxu1 %v1532_v21 }
  0x75   : > { %502 = vmatmul.mubr.bf16.vlgmr.msra.gmra.mrb[0].mxu0 %v1356_v34  ;;  %580 = vmatmul.mubr.bf16.vlgmr.msra.gmra.mrb[0].mxu1 %v1359_v35 }
  0x76   : > { %630 = vmatpush1.bf16.msra.mxu0 %v1703_v20  ;;  %712 = vmatpush1.bf16.msra.mxu1 %v1703_v20 }
  0x77   : > { %631 = vmatprep.subr.bf16.mxu0 %v1532_v21  ;;  %713 = vmatprep.subr.bf16.mxu1 %v1532_v21 }
  0x78   : > { %1117 = vmatprep.mubr.msk.bf16.mxu0 %vm458_vm0, %v1362_v36  ;;  %1127 = vmatprep.mubr.msk.bf16.mxu1 %vm458_vm0, %v1365_v37 }
  0x7a   : > { %632 = vmatpush1.bf16.msra.mxu0 %v1712_v22  ;;  %714 = vmatpush1.bf16.msra.mxu1 %v1712_v22 }
  0x7b   : > { %633 = vmatprep.subr.bf16.mxu0 %v1532_v21  ;;  %715 = vmatprep.subr.bf16.mxu1 %v1532_v21 }
  0x7d   : > { %510 = vmatmul.mubr.bf16.gmra.mrb[4].mxu0 %v1364_v38  ;;  %588 = vmatmul.mubr.bf16.gmra.mrb[4].mxu1 %v1367_v39 }
  0x7e   : > { %634 = vmatpush1.bf16.msra.mxu0 %v1724_v23  ;;  %716 = vmatpush1.bf16.msra.mxu1 %v1724_v23 }
  0x7f   : > { %635 = vmatprep.subr.bf16.mxu0 %v1532_v21  ;;  %717 = vmatprep.subr.bf16.mxu1 %v1532_v21 }
  0x80   : > { %1136 = vmatprep.mubr.msk.bf16.mxu0 %vm458_vm0, %v1370_v40  ;;  %1146 = vmatprep.mubr.msk.bf16.mxu1 %vm458_vm0, %v1373_v41 }
  0x82   : > { %636 = vmatpush1.bf16.msra.mxu0 %v1735_v24  ;;  %718 = vmatpush1.bf16.msra.mxu1 %v1735_v24 }
  0x83   : > { %637 = vmatprep.subr.bf16.mxu0 %v1532_v21  ;;  %719 = vmatprep.subr.bf16.mxu1 %v1532_v21 }
  0x86   : > { %638 = vmatpush1.bf16.msra.mxu0 %v1747_v27  ;;  %720 = vmatpush1.bf16.msra.mxu1 %v1747_v27 }
  0x87   : > { %639 = vmatprep.subr.bf16.mxu0 %v1532_v21  ;;  %721 = vmatprep.subr.bf16.mxu1 %v1532_v21 }
  0x8a   : > { %640 = vmatpush1.bf16.msra.mxu0 %v1757_v28  ;;  %722 = vmatpush1.bf16.msra.mxu1 %v1757_v28 }
  0x8b   : > { %641 = vmatprep.subr.bf16.mxu0 %v1532_v21  ;;  %723 = vmatprep.subr.bf16.mxu1 %v1532_v21 }
  0x8e   : > { %642 = vmatpush1.bf16.msra.mxu0 %v1766_v29  ;;  %724 = vmatpush1.bf16.msra.mxu1 %v1766_v29 }
  0x8f   : > { %643 = vmatprep.subr.bf16.mxu0 %v1532_v21  ;;  %725 = vmatprep.subr.bf16.mxu1 %v1532_v21 }
  0x92   : > { %644 = vmatpush1.bf16.msra.mxu0 %v1775_v30  ;;  %726 = vmatpush1.bf16.msra.mxu1 %v1775_v30 }
  0x93   : > { %645 = vmatprep.subr.bf16.mxu0 %v1532_v21  ;;  %727 = vmatprep.subr.bf16.mxu1 %v1532_v21 }
  0x96   : > { %646 = vmatpush1.bf16.msra.mxu0 %v1354_v31  ;;  %728 = vmatpush1.bf16.msra.mxu1 %v1354_v31 }
  0x97   : > { %647 = vmatprep.subr.bf16.mxu0 %v1532_v21  ;;  %729 = vmatprep.subr.bf16.mxu1 %v1532_v21 }
  0x9a   : > { %648 = vmatpush1.bf16.msra.mxu0 %v467_v33  ;;  %730 = vmatpush1.bf16.msra.mxu1 %v467_v33 }
  0x9d   : > { %662 = vmatmul.mubr.bf16.vlgmr.msra.gmra.mrb[8].mxu0 %v1368_v42  ;;  %744 = vmatmul.mubr.bf16.vlgmr.msra.gmra.mrb[8].mxu1 %v1371_v43 }
  0x9e   : > { %1137 = vmatprep.mubr.msk.bf16.mxu0 %vm458_vm0, %v1374_v44  ;;  %1147 = vmatprep.mubr.msk.bf16.mxu1 %vm458_vm0, %v1376_v45 }
  0xa5   : > { %670 = vmatmul.mubr.bf16.gmra.mrb[12].mxu0 %v1378_v46  ;;  %752 = vmatmul.mubr.bf16.gmra.mrb[12].mxu1 %v1379_v47 }
 0x148   : > { %v503_v48 = vpop.f32.mrb[0].mxu0  ;;  %v581_v49 = vpop.f32.mrb[0].mxu1 }
 0x149   : > { %v596_v50 = vmax.f32 %v503_v48, %v581_v49  ;;  %v505_v51 = vpop.f32.mrb[1].mxu0  ;;  %v583_v52 = vpop.f32.mrb[1].mxu1 }
 0x14a   : > { %v506_v53 = vpop.f32.mrb[2].mxu0  ;;  %v584_v54 = vpop.f32.mrb[2].mxu1 }
 0x14b   : > { %v597_v55 = vmax.f32 %v506_v53, %v584_v54  ;;  %v508_v56 = vpop.f32.mrb[3].mxu0  ;;  %v586_v57 = vpop.f32.mrb[3].mxu1 }
 0x150   : > { %v511_v58 = vpop.f32.mrb[4].mxu0  ;;  %v589_v59 = vpop.f32.mrb[4].mxu1 }
 0x151   : > { %v513_v60 = vpop.f32.mrb[5].mxu0  ;;  %v598_v61 = vmax.f32 %v511_v58, %v589_v59  ;;  %v591_v62 = vpop.f32.mrb[5].mxu1 }
 0x152   : > { %v514_v63 = vpop.f32.mrb[6].mxu0  ;;  %v592_v0 = vpop.f32.mrb[6].mxu1 }
 0x153   : > { %v516_v1 = vpop.f32.mrb[7].mxu0  ;;  %v599_v2 = vmax.f32 %v514_v63, %v592_v0  ;;  %v594_v3 = vpop.f32.mrb[7].mxu1 }
 0x170   : > { %v663_v4 = vpop.f32.mrb[8].mxu0  ;;  %v745_v5 = vpop.f32.mrb[8].mxu1 }
 0x171   : > { %v678_v6 = vmax.f32 %v596_v50, %v663_v4  ;;  %v665_v7 = vpop.f32.mrb[9].mxu0  ;;  %v747_v8 = vpop.f32.mrb[9].mxu1 }
 0x172   : > { %v666_v10 = vpop.f32.mrb[10].mxu0  ;;  %v748_v11 = vpop.f32.mrb[10].mxu1 }
 0x173   : > { %v760_v12 = vmax.f32 %v678_v6, %v745_v5  ;;  %v679_v13 = vmax.f32 %v597_v55, %v666_v10  ;;  %v668_v14 = vpop.f32.mrb[11].mxu0  ;;  %v750_v15 = vpop.f32.mrb[11].mxu1 }
 0x175   : > { %v771_v16 = vadd.f32 %v1148_v9, %v760_v12  ;;  %v761_v17 = vmax.f32 %v679_v13, %v748_v11 }
 0x177   : > { %v772_v18 = vadd.f32 %v1148_v9, %v761_v17  ;;  %v775_v21 = vmax.f32 %v771_v16, 0.0 }
 0x178   : > { %v671_v19 = vpop.f32.mrb[12].mxu0  ;;  %v753_v20 = vpop.f32.mrb[12].mxu1 }
 0x179   : > { %v776_v22 = vmax.f32 %v772_v18, 0.0  ;;  %v680_v23 = vmax.f32 %v598_v61, %v671_v19  ;;  %v673_v24 = vpop.f32.mrb[13].mxu0  ;;  %v755_v25 = vpop.f32.mrb[13].mxu1 }
 0x17a   : > { %v674_v26 = vpop.f32.mrb[14].mxu0  ;;  %v756_v27 = vpop.f32.mrb[14].mxu1 }
 0x17b   : > { %v1185_v28 = vpack.c.bf16 %v776_v22, %v775_v21  ;;  %v762_v29 = vmax.f32 %v680_v23, %v753_v20  ;;  %v681_v30 = vmax.f32 %v599_v2, %v674_v26  ;;  %v676_v31 = vpop.f32.mrb[15].mxu0  ;;  %v758_v32 = vpop.f32.mrb[15].mxu1 }
 0x17d   : > { %1186 = vst [vmem:[%s1852_s6] sm:$0xff] %v1185_v28   ;;  %v773_v33 = vadd.f32 %v1148_v9, %v762_v29  ;;  %v763_v34 = vmax.f32 %v681_v30, %v756_v27 }
 0x17f   : > { %v774_v35 = vadd.f32 %v1148_v9, %v763_v34  ;;  %v777_v36 = vmax.f32 %v773_v33, 0.0  ;;  %805 = sbr.rel (!%p1584_p5) target bundleno = 443 (0x1bb), region = 88 }
 0x181   : > { %v778_v37 = vmax.f32 %v774_v35, 0.0 }
 0x183   : > { %v1190_v38 = vpack.c.bf16 %v778_v37, %v777_v36 }
 0x185   : > { %1192 = vst [vmem:[%s1852_s6 + $0x8] sm:$0xff] %v1190_v38  }
 0x186   : > { %s1935_s7 = smov (!%p808_p4, %s807_s7), 4 }
 0x187   : > { %s1155_s11 = sshll.u32 %s1935_s7, 6 }
 0x188   : > { %p1158_p6 = scmp.eq.s32.totalorder %s1155_s11, 0 }
 0x189   : > { %s1869_s20 = sshrl.u32 (!%p1158_p6), %s1935_s7, 2 }
 0x18a   : > { %816 = sbr.rel (%p1158_p6) target bundleno = 443 (0x1bb), region = 92  ;;  %p1159_p5 = scmp.le.s32.totalorder (!%p1158_p6), %s1869_s20, 0 }
 0x191   : > { %1035 = sbr.rel (%p1159_p5) target bundleno = 422 (0x1a6), region = 202  ;;  %s1922_s15 = smov (!%p1159_p5), %s1863_s10 }
 0x192   : > { %s1923_s17 = smov (!%p1159_p5), %s1852_s6  ;;  %s1878_s18 = smov (!%p1159_p5), 0  }
 0x193   : > { %s1512_s21 = smov (!%p1159_p5), 0  }
 0x198 LB: >> { %v832_v39 = vld [vmem:[%s1506_s17] sm:$0xf]  ;;  %v834_v40 = vld [vmem:[%s1506_s17 + $0x4] sm:$0xf]  ;;  %v836_v41 = vld [vmem:[%s1506_s17 + $0x8] sm:$0xf]  ;;  %s1514_s21 = sphi %s1512_s21, %s826_s21   ;;  %s1510_s18 = sphi %s1878_s18, %s1924_s18   ;;  %s1506_s17 = sphi %s1923_s17, %s845_s17   ;;  %s1502_s15 = sphi %s1922_s15, %s846_s15  }
 0x199   : >> { %833 = vst [vmem:[%s1502_s15] sm:$0xf] %v832_v39  ;;  %835 = vst [vmem:[%s1502_s15 + $0x4] sm:$0xf] %v834_v40  ;;  %v838_v42 = vld [vmem:[%s1506_s17 + $0xc] sm:$0xf]  ;;  %s840_s22 = sadd.s32 1, %s1510_s18 }
 0x19a   : >> { %837 = vst [vmem:[%s1502_s15 + $0x8] sm:$0xf] %v836_v41  ;;  %839 = vst [vmem:[%s1502_s15 + $0xc] sm:$0xf] %v838_v42  ;;  %p841_p7 = scmp.ge.s32.totalorder %s840_s22, %s1869_s20  ;;  %s826_s21 = sadd.s32 1, %s1514_s21  }
 0x19b   : >> { %p825_p8 = scmp.ge.s32.totalorder %s826_s21, %s1869_s20 }
 0x19c   : >> { %s1937_s22 = smov (%p841_p7, %s840_s22), 0 }
 0x19d   : >> { %s1160_s23 = sshll.u32 %s1937_s22, 4  ;;  %s1924_s18 = smov %s1937_s22 }
 0x19e   : >> { %s845_s17 = scalar_lea.vmem %s1852_s6, %s1160_s23 [#allocation3]   ;;  %s846_s15 = scalar_lea.vmem %s1863_s10, %s1160_s23  }
 0x19f   : > { %828 = sbr.rel (!%p825_p8) target bundleno = 408 (0x198), region = 208 }
 0x1a6 PF: > { %s1894_s25 = sand.u32 3, %s1935_s7   ;;  %s1180_s26 = sshll.u32 %s1869_s20, 4 }
 0x1a7   : > { %s851_s24 = scalar_lea.vmem %s1852_s6, %s1180_s26 [#allocation3]   ;;  %s853_s27 = scalar_lea.vmem %s1863_s10, %s1180_s26  }
 0x1a8   : > { %p1165_p9 = scmp.le.s32.totalorder %s1894_s25, 0 }
 0x1a9   : > { %s1516_s28 = smov (!%p1165_p9), %s853_s27   ;;  %s1520_s29 = smov (!%p1165_p9), %s851_s24  }
 0x1aa   : > { %1049 = sbr.rel (%p1165_p9) target bundleno = 443 (0x1bb), region = 213  ;;  %s1524_s30 = smov (!%p1165_p9), 0  }
 0x1ab   : > { %s1528_s14 = smov (!%p1165_p9), 0  }
 0x1b1 LB: >> { %v863_v43 = vld [vmem:[%s1522_s29] sm:$0xf]  ;;  %s865_s5 = sadd.s32 1, %s1526_s30  ;;  %s857_s14 = sadd.s32 1, %s1530_s14   ;;  %s1530_s14 = sphi %s1528_s14, %s857_s14   ;;  %s1526_s30 = sphi %s1524_s30, %s1525_s30   ;;  %s1522_s29 = sphi %s1520_s29, %s870_s29   ;;  %s1518_s28 = sphi %s1516_s28, %s871_s28  }
 0x1b2   : >> { %864 = vst [vmem:[%s1518_s28] sm:$0xf] %v863_v43  ;;  %p866_p10 = scmp.ge.s32.totalorder %s865_s5, %s1894_s25  ;;  %p856_p11 = scmp.ge.s32.totalorder %s857_s14, %s1894_s25 }
 0x1b4   : >> { %s1939_s5 = smov (%p866_p10, %s865_s5), 0  ;;  %859 = sbr.rel (!%p856_p11) target bundleno = 433 (0x1b1), region = 219 }
 0x1b5   : >> { %s1166_s6 = sshll.u32 %s1939_s5, 2  ;;  %s1525_s30 = smov %s1939_s5  }
 0x1b6   : >> { %s870_s29 = scalar_lea.vmem %s851_s24, %s1166_s6 [#allocation3]   ;;  %s871_s28 = scalar_lea.vmem %s853_s27, %s1166_s6  }
 0x1bb PF: > { %p10_p12 = scmp.ge.s32.totalorder %s1572_s16, 4   ;;  %s1925_s12 = smov %s1462_s13 }
 0x1bc   : > { %s1926_s13 = smov %s1582_s19  ;;  %s1927_s14 = smov %s1572_s16 }
 0x1bd   :  { %12 = sbr.rel (!%p10_p12) target bundleno = 2 (0x2), region = 230 }

// kernel: net_forward.5
= control target key start
LH: loop header
LB: loop body
LE: loop exit
PB: predicated region body
PF: predicated region fallthrough
CT: control target
= control target key end

     0   :  { %12 = vsyncpa [#allocation3], 0  ;;  %v808_v1 = vmov 0   ;;  %v98_v19 = vlaneseq  ;;  %v809_v27 = vmov 1966171168   ;;  %vm280_vm0 = vcmask 130048   ;;  %s1033_s0 = inlined_call_operand.vmem [shape: bf16[2,400], index: 0, kind: input, shape index: {}]   ;;  %s1034_s1 = inlined_call_operand.vmem [shape: bf16[400,128], index: 1, kind: input, shape index: {}]   ;;  %s1035_s2 = inlined_call_operand.vmem [shape: f32[1,128], index: 2, kind: input, shape index: {}]   ;;  %s1036_s3 = inlined_call_operand.vmem [shape: bf16[128,128], index: 3, kind: input, shape index: {}]   ;;  %s1037_s4 = inlined_call_operand.vmem [shape: f32[1,128], index: 4, kind: input, shape index: {}]   ;;  %s1038_s5 = inlined_call_operand.vmem [shape: bf16[128,128], index: 5, kind: input, shape index: {}]   ;;  %s1039_s6 = inlined_call_operand.vmem [shape: f32[1,128], index: 6, kind: input, shape index: {}]   ;;  %s1040_s7 = inlined_call_operand.hbm [shape: f32[2,128], index: 7, kind: output, shape index: {}]  }
   0x1   :  { %v739_v0 = vld [vmem:[%s1034_s1 + $0x40] sm:$0xff]   ;;  %324 = vmatprep.subr.bf16.mxu1 %v808_v1  ;;  %v742_v4 = vld [vmem:[%s1034_s1 + $0x48] sm:$0xff]   ;;  %v745_v7 = vld [vmem:[%s1034_s1 + $0x50] sm:$0xff]   ;;  %v96_v28 = vunpack.c.l.s4 %v809_v27  ;;  %v810_v34 = vmov 0.0   ;;  %vm811_vm1 = vmmov 0  }
   0x2   :  { %652 = vmatprep.subr.bf16.mxu0 %v739_v0  ;;  %v740_v2 = vld [vmem:[%s1034_s1 + $0x80] sm:$0xff]   ;;  %v743_v5 = vld [vmem:[%s1034_s1 + $0x88] sm:$0xff]   ;;  %v746_v8 = vld [vmem:[%s1034_s1 + $0x90] sm:$0xff]   ;;  %v99_v23 = vshrl.u32 %v98_v19, 7 }
   0x3   :  { %v741_v3 = vld [vmem:[%s1034_s1] sm:$0xff]   ;;  %325 = vmatpush1.bf16.msra.mxu1 %v740_v2  ;;  %v744_v6 = vld [vmem:[%s1034_s1 + $0x8] sm:$0xff]   ;;  %v747_v9 = vld [vmem:[%s1034_s1 + $0x10] sm:$0xff]   ;;  %v97_v31 = vunpack.c.0.s8 %v96_v28 }
   0x4   :  { %653 = vmatpush3.bf16.msra.mxu0 %v741_v3  ;;  %326 = vmatprep.subr.bf16.mxu1 %v808_v1  ;;  %v748_v10 = vld [vmem:[%s1034_s1 + $0x58] sm:$0xff]   ;;  %v751_v13 = vld [vmem:[%s1034_s1 + $0x60] sm:$0xff]   ;;  %v754_v16 = vld [vmem:[%s1034_s1 + $0x68] sm:$0xff]  }
   0x5   :  { %654 = vmatprep.subr.bf16.mxu0 %v742_v4  ;;  %v749_v11 = vld [vmem:[%s1034_s1 + $0x98] sm:$0xff]   ;;  %v752_v14 = vld [vmem:[%s1034_s1 + $0xa0] sm:$0xff]   ;;  %v755_v17 = vld [vmem:[%s1034_s1 + $0xa8] sm:$0xff]   ;;  %v100_v32 = vsub.s32 %v97_v31, %v99_v23 }
   0x6   :  { %v750_v12 = vld [vmem:[%s1034_s1 + $0x18] sm:$0xff]   ;;  %v753_v15 = vld [vmem:[%s1034_s1 + $0x20] sm:$0xff]   ;;  %v756_v18 = vld [vmem:[%s1034_s1 + $0x28] sm:$0xff]  }
   0x7   :  { %327 = vmatpush1.bf16.msra.mxu1 %v743_v5  ;;  %v757_v20 = vld [vmem:[%s1034_s1 + $0x70] sm:$0xff]   ;;  %v760_v24 = vld [vmem:[%s1034_s1 + $0x78] sm:$0xff]   ;;  %v782_v29 = vld.sshfl [vmem:[%s1033_s0] sm:$0xff pattern:$0x75316420] }
   0x8   :  { %655 = vmatpush3.bf16.msra.mxu0 %v744_v6  ;;  %328 = vmatprep.subr.bf16.mxu1 %v808_v1  ;;  %v758_v21 = vld [vmem:[%s1034_s1 + $0xb0] sm:$0xff]   ;;  %v761_v25 = vld [vmem:[%s1034_s1 + $0xb8] sm:$0xff]   ;;  %v783_v30 = vld.sshfl [vmem:[%s1033_s0 + $0x8] sm:$0xff pattern:$0x75316420] }
   0x9   :  { %656 = vmatprep.subr.bf16.mxu0 %v745_v7  ;;  %v759_v22 = vld [vmem:[%s1034_s1 + $0x30] sm:$0xff]   ;;  %v762_v26 = vld [vmem:[%s1034_s1 + $0x38] sm:$0xff]   ;;  %v765_v33 = vld [vmem:[%s1034_s1 + $0xc0] sm:$0xff]   ;;  %v110_v35 = vcombine.high %v782_v29, %v783_v30  ;;  %v109_v36 = vcombine.low %v782_v29, %v783_v30 }
   0xa   :  { %v766_v37 = vld [vmem:[%s1036_s3] sm:$0xff]   ;;  %v767_v42 = vld [vmem:[%s1036_s3 + $0x8] sm:$0xff]   ;;  %v768_v43 = vld [vmem:[%s1036_s3 + $0x10] sm:$0xff]  }
   0xb   :  { %329 = vmatpush1.bf16.msra.mxu1 %v746_v8  ;;  %v124_v38 = vrot.slane %v110_v35, %v100_v32  ;;  %v117_v39 = vrot.slane %v109_v36, %v100_v32  ;;  %v769_v44 = vld [vmem:[%s1036_s3 + $0x18] sm:$0xff]   ;;  %v770_v45 = vld [vmem:[%s1036_s3 + $0x20] sm:$0xff]   ;;  %v771_v46 = vld [vmem:[%s1036_s3 + $0x28] sm:$0xff]  }
   0xc   :  { %657 = vmatpush3.bf16.msra.mxu0 %v747_v9  ;;  %330 = vmatprep.subr.bf16.mxu1 %v808_v1  ;;  %v772_v47 = vld [vmem:[%s1036_s3 + $0x30] sm:$0xff]   ;;  %v773_v48 = vld [vmem:[%s1036_s3 + $0x38] sm:$0xff]   ;;  %v774_v49 = vld [vmem:[%s1038_s5] sm:$0xff]  }
   0xd   :  { %658 = vmatprep.subr.bf16.mxu0 %v748_v10  ;;  %316 = vmatprep.mubr.bf16.mxu0 %v124_v38  ;;  %v126_v40 = vcombine.high %v124_v38, %v124_v38  ;;  %v125_v41 = vcombine.high %v117_v39, %v117_v39  ;;  %v775_v50 = vld [vmem:[%s1038_s5 + $0x8] sm:$0xff]   ;;  %v776_v51 = vld [vmem:[%s1038_s5 + $0x10] sm:$0xff]   ;;  %v777_v52 = vld [vmem:[%s1038_s5 + $0x18] sm:$0xff]  }
   0xe   :  { %v778_v53 = vld [vmem:[%s1038_s5 + $0x20] sm:$0xff]   ;;  %v779_v54 = vld [vmem:[%s1038_s5 + $0x28] sm:$0xff]   ;;  %v780_v5 = vld [vmem:[%s1038_s5 + $0x30] sm:$0xff]  }
   0xf   :  { %331 = vmatpush1.bf16.msra.mxu1 %v749_v11  ;;  %633 = vmatprep.mubr.msk.bf16.mxu1 %vm280_vm0, %v126_v40  ;;  %v607_v57 = vld [vmem:[%s1035_s2] ss:$0 sm:$0xff]  ;;  %v781_v6 = vld [vmem:[%s1038_s5 + $0x38] sm:$0xff]  }
  0x10   :  { %659 = vmatpush3.bf16.msra.mxu0 %v750_v12  ;;  %332 = vmatprep.subr.bf16.mxu1 %v808_v1  ;;  %v634_v7 = vld [vmem:[%s1037_s4] ss:$0 sm:$0xff] }
  0x11   :  { %660 = vmatprep.subr.bf16.mxu0 %v751_v13 }
  0x13   :  { %333 = vmatpush1.bf16.msra.mxu1 %v752_v14 }
  0x14   :  { %661 = vmatpush3.bf16.msra.mxu0 %v753_v15  ;;  %334 = vmatprep.subr.bf16.mxu1 %v808_v1  ;;  %v643_v15 = vld [vmem:[%s1039_s6] ss:$0 sm:$0xff] }
  0x15   :  { %662 = vmatprep.subr.bf16.mxu0 %v754_v16 }
  0x17   :  { %335 = vmatpush1.bf16.msra.mxu1 %v755_v17 }
  0x18   :  { %663 = vmatpush3.bf16.msra.mxu0 %v756_v18  ;;  %336 = vmatprep.subr.bf16.mxu1 %v808_v1 }
  0x19   :  { %664 = vmatprep.subr.bf16.mxu0 %v757_v20 }
  0x1b   :  { %337 = vmatpush1.bf16.msra.mxu1 %v758_v21 }
  0x1c   :  { %665 = vmatpush3.bf16.msra.mxu0 %v759_v22  ;;  %338 = vmatprep.subr.bf16.mxu1 %v808_v1 }
  0x1d   :  { %666 = vmatprep.subr.bf16.mxu0 %v760_v24 }
  0x1f   :  { %339 = vmatpush1.bf16.msra.mxu1 %v761_v25 }
  0x20   :  { %667 = vmatpush3.bf16.msra.mxu0 %v762_v26  ;;  %340 = vmatprep.subr.bf16.mxu1 %v808_v1 }
  0x21   :  { %692 = vmatprep.subr.bf16.mxu0 %v810_v34 }
  0x23   :  { %341 = vmatpush1.bf16.msra.mxu1 %v765_v33  ;;  %317 = vmatmul.mubr.bf16.vlgmr.msra.gmra.mrb[0].mxu0 %v117_v39 }
  0x24   :  { %712 = vmatprep.subr.bf16.mxu1 %v810_v34  ;;  %693 = vmatpush3.bf16.msra.mxu0 %v766_v37 }
  0x25   :  { %694 = vmatprep.subr.bf16.mxu0 %v810_v34  ;;  %708 = vmatprep.mubr.msk.bf16.mxu0 %vm811_vm1, %v810_v34 }
  0x26   :  { %357 = vmatmul.mubr.bf16.vlgmr.msra.gmra.mrb[0].mxu1 %v125_v41 }
  0x27   :  { %728 = vmatprep.mubr.msk.bf16.mxu1 %vm811_vm1, %v810_v34  ;;  %713 = vmatpush3.bf16.msra.mxu1 %v774_v49 }
  0x28   :  { %695 = vmatpush3.bf16.msra.mxu0 %v767_v42  ;;  %714 = vmatprep.subr.bf16.mxu1 %v810_v34 }
  0x29   :  { %696 = vmatprep.subr.bf16.mxu0 %v810_v34 }
  0x2b   :  { %715 = vmatpush3.bf16.msra.mxu1 %v775_v50 }
  0x2c   :  { %697 = vmatpush3.bf16.msra.mxu0 %v768_v43  ;;  %716 = vmatprep.subr.bf16.mxu1 %v810_v34 }
  0x2d   :  { %698 = vmatprep.subr.bf16.mxu0 %v810_v34 }
  0x2f   :  { %717 = vmatpush3.bf16.msra.mxu1 %v776_v51 }
  0x30   :  { %699 = vmatpush3.bf16.msra.mxu0 %v769_v44  ;;  %718 = vmatprep.subr.bf16.mxu1 %v810_v34 }
  0x31   :  { %700 = vmatprep.subr.bf16.mxu0 %v810_v34 }
  0x33   :  { %719 = vmatpush3.bf16.msra.mxu1 %v777_v52 }
  0x34   :  { %701 = vmatpush3.bf16.msra.mxu0 %v770_v45  ;;  %720 = vmatprep.subr.bf16.mxu1 %v810_v34 }
  0x35   :  { %702 = vmatprep.subr.bf16.mxu0 %v810_v34 }
  0x37   :  { %721 = vmatpush3.bf16.msra.mxu1 %v778_v53 }
  0x38   :  { %703 = vmatpush3.bf16.msra.mxu0 %v771_v46  ;;  %722 = vmatprep.subr.bf16.mxu1 %v810_v34 }
  0x39   :  { %704 = vmatprep.subr.bf16.mxu0 %v810_v34 }
  0x3b   :  { %723 = vmatpush3.bf16.msra.mxu1 %v779_v54 }
  0x3c   :  { %705 = vmatpush3.bf16.msra.mxu0 %v772_v47  ;;  %724 = vmatprep.subr.bf16.mxu1 %v810_v34 }
  0x3d   :  { %706 = vmatprep.subr.bf16.mxu0 %v810_v34 }
  0x3f   :  { %725 = vmatpush3.bf16.msra.mxu1 %v780_v5 }
  0x40   :  { %707 = vmatpush3.bf16.msra.mxu0 %v773_v48  ;;  %726 = vmatprep.subr.bf16.mxu1 %v810_v34 }
  0x43   :  { %727 = vmatpush3.bf16.msra.mxu1 %v781_v6 }
  0xf6   :  { %v668_v55 = vpop.f32.mrb[0].mxu0 }
  0xf7   :  { %v669_v56 = vpop.f32.mrb[1].mxu0 }
  0xf8   :  { %v670_v58 = vadd.f32 %v669_v56, %v668_v55  ;;  %v671_v59 = vpop.f32.mrb[2].mxu0 }
  0xf9   :  { %v358_v60 = vpop.f32.mrb[0].mxu1  ;;  %v672_v61 = vpop.f32.mrb[3].mxu0 }
  0xfa   :  { %v360_v62 = vpop.f32.mrb[1].mxu1  ;;  %v319_v63 = vadd.f32 %v670_v58, %v607_v57 }
  0xfb   :  { %v361_v0 = vpop.f32.mrb[2].mxu1 }
  0xfc   :  { %v362_v1 = vpop.f32.mrb[3].mxu1  ;;  %v359_v2 = vadd.f32 %v358_v60, %v319_v63 }
  0xfe   :  { %v364_v3 = vmax.f32 %v359_v2, 0.0 }
 0x100   :  { %v365_v4 = vpack.c.bf16 %v364_v3, %v364_v3 }
 0x102   :  { %709 = vmatmul.mubr.bf16.vlgmr.msra.gmra.mrb[4].mxu0 %v365_v4 }
 0x1d5   :  { %v471_v8 = vpop.f32.mrb[4].mxu0 }
 0x1d6   :  { %v472_v9 = vadd.f32 %v634_v7, %v471_v8  ;;  %v710_v10 = vpop.f32.mrb[5].mxu0 }
 0x1d7   :  { %v474_v11 = vpop.f32.mrb[6].mxu0 }
 0x1d8   :  { %v477_v12 = vmax.f32 %v472_v9, 0.0  ;;  %v711_v13 = vpop.f32.mrb[7].mxu0 }
 0x1da   :  { %v478_v14 = vpack.c.bf16 %v477_v12, %v477_v12 }
 0x1dc   :  { %729 = vmatmul.mubr.bf16.vlgmr.msra.gmra.mrb[4].mxu1 %v478_v14 }
 0x2af   :  { %v584_v16 = vpop.f32.mrb[4].mxu1 }
 0x2b0   :  { %v585_v17 = vadd.f32 %v643_v15, %v584_v16  ;;  %v730_v18 = vpop.f32.mrb[5].mxu1 }
 0x2b1   :  { %v587_v19 = vpop.f32.mrb[6].mxu1 }
 0x2b2   :  { %590 = vst [vmem:[#allocation2] sm:$0xff] %v585_v17  ;;  %v731_v20 = vpop.f32.mrb[7].mxu1 }
 0x2b3   :  { %595 = vsyncadd [#allocation3], 96  ;;  %s812_s4 = smov [#allocation2]  }
 0x2b4   :  { %s596_s5 = sshll.u32 %s812_s4, 4  ;;  %s597_s5 = int_to_ptr.vmem [resolvable:$true] %s596_s5 }
 0x2b5   :  { %s784_s18 = scalar_lea.vmem %s597_s5, 32  ;;  %s788_s19 = scalar_lea.vmem %s597_s5, 128 }
 0x2b6   :  { %p785_p0 = scmp.ne.s32.totalorder %s597_s5, %s784_s18  ;;  %p789_p1 = scmp.lt.s32.totalorder %s597_s5, %s597_s5 }
 0x2b7   :  { %p790_p2 = scmp.lt.s32.totalorder %s788_s19, %s784_s18 }
 0x2b9   :  { %p791_p3 = por %p790_p2, %p789_p1 }
 0x2bb   :  { %p792_p4 = pnand %p791_p3, %p785_p0 }
 0x2bd   :  { %795 = shalt.err (!%p792_p4)
}
 0x2be   :  { %s796_s21 = scalar_lea.hbm %s1040_s7, 32 }
 0x2bf   :  { %p797_p5 = scmp.ne.s32.totalorder %s1040_s7, %s796_s21  ;;  %p800_p6 = scmp.lt.u32.totalorder %s796_s21, %s1040_s7 }
 0x2c1   :  { %p802_p7 = pnand %p800_p6, %p797_p5 }
 0x2c3   :  { %805 = shalt.err (!%p802_p7)
}
 0x2c4   :  { %s813_s26 = smov 32   ;;  %s814_s27 = smov 2  }
 0x2c5   :  { %602 = dma.vmem_to_hbm [thread:$0]  %s597_s5, 32, %s1040_s7, [#allocation3], %s813_s26, %s813_s26, %s814_s27  }
 0x2c6   :  { %806 = dma.done.wait [#allocation3], 128  }
 0x2c7   :  { %807 = vsyncadd [#allocation3], 4294967168 }
 0x2c8   :  { %606 = vsyncpa [#allocation3], 1 }

</bundles_post_ra>
